<compile_context>
chip_gen: v6e
topology: v6e:2x2x1
jax: 0.10.0
libtpu: 0.0.40
codegen_flags: <defaults>
</compile_context>

<pallas_src>
import math
import jax
import jax.numpy as jnp
from jax.experimental import pallas as pl
from jax.experimental.pallas import tpu as pltpu

# ----------------------------- configuration --------------------------------
B = 2            # batch
T = 8            # sequence length
FEAT = 16        # REWARD_LEARNING.feature_size == input_size (FiLM branch)
N_ACTIONS = 6    # REWARD_LEARNING.n_actions
ACT_EMB = 6      # REWARD_LEARNING.action_embedding_dim
HIDDEN = 32      # REWARD_LEARNING.n_units
N_LAYERS = 2     # REWARD_LEARNING.n_layers
LEAKY_SLOPE = 0.02


def _leaky(x):
    return jnp.where(x > 0, x, LEAKY_SLOPE * x)


# ------------------------------ fused Pallas kernel --------------------------
def make_fused_kernel(t_len, bsz, hidden, feat, act_emb):
    """Single invocation: FiLM -> wavefronted 2-layer LSTM -> heads, all in VMEM."""
    H = hidden
    F = feat
    hh = H // 2
    n = t_len * bsz
    bf16 = jnp.bfloat16
    f32 = jnp.float32

    def kernel(states_ref, act_ref, w_lstm_ref, w_small_ref, bias_ref,
               q_ref, qe_ref):
        # ---- unpack the packed weight slabs (static, 16-row-aligned slices)
        wx1 = w_lstm_ref[0:F, :]                  # (F, 4H)  bf16 layer-1 input proj
        wh1 = w_lstm_ref[16:16 + H, :]            # (H, 4H)  bf16 layer-1 recurrent
        w2c = w_lstm_ref[48:48 + 2 * H, :]        # (2H,4H)  bf16 [Wx2; Wh2] stacked
        film_w = w_small_ref[0:act_emb, :]        # (A, 2F)  bf16 [Wgamma | Wbeta]
        w12 = w_small_ref[16:16 + H, :]           # (H, 2hh) bf16 [post_fc1 | post_fc2]
        wout = w_small_ref[48:48 + H, 0:2]        # (2hh, 2) bf16 blkdiag [linear|aux]
        film_b = bias_ref[0:1, 0:2 * F]           # (1, 2F)  f32
        b1 = bias_ref[1:2, :]                     # (1, 4H)  f32 (b_ih + b_hh, layer 1)
        b2 = bias_ref[2:3, :]                     # (1, 4H)  f32 (layer 2)
        b12 = bias_ref[3:4, 0:2 * hh]             # (1, 2hh) f32
        bout = bias_ref[4:5, 0:2]                 # (1, 2)   f32

        # ---- FiLM: in-kernel one-hot (iota compare) @ [Wg|Wb]   (row lookup on MXU)
        act = act_ref[...]                                            # (n, 1) int32
        lane = jax.lax.broadcasted_iota(jnp.int32, (n, act_emb), 1)
        onehot = jnp.where(act == lane, 1.0, 0.0).astype(bf16)        # (n, A)
        gb = jnp.dot(onehot, film_w, preferred_element_type=f32) + film_b
        gamma = gb[:, 0:F]
        beta = gb[:, F:2 * F]
        x = gamma * states_ref[...] + beta                            # (n, F) f32

        # ---- layer-1 input projection hoisted out of the recurrence
        gx1 = jnp.dot(x.astype(bf16), wx1, preferred_element_type=f32) + b1  # (n,4H)
        # rows are batch-major (row = b*T + t): gather the (B, 4H) block per step
        gx1_t = [jnp.concatenate(
                     [gx1[b * t_len + t: b * t_len + t + 1, :] for b in range(bsz)],
                     axis=0)
                 for t in range(t_len)]

        def gates(z):
            # one full-vreg sigmoid + one full-vreg tanh, then static lane slices
            sg = jax.nn.sigmoid(z)
            th = jnp.tanh(z)
            return sg[:, 0:H], sg[:, H:2 * H], th[:, 2 * H:3 * H], sg[:, 3 * H:4 * H]

        # ---- wavefronted 2-layer LSTM recurrence (PyTorch gate order i|f|g|o)
        h1_bf = jnp.zeros((bsz, H), bf16)
        h2_bf = jnp.zeros((bsz, H), bf16)
        c1 = jnp.zeros((bsz, H), f32)
        c2 = jnp.zeros((bsz, H), f32)
        outs = []
        for t in range(t_len + 1):
            if t >= 1:
                # layer-2 step t-1: consumes h1[t-1] (h1_bf not yet updated here)
                lin2 = jnp.concatenate([h1_bf, h2_bf], axis=1)        # (B, 2H)
                z2 = jnp.dot(lin2, w2c, preferred_element_type=f32) + b2
                i2, f2, g2, o2 = gates(z2)
                c2 = f2 * c2 + i2 * g2
                h2 = o2 * jnp.tanh(c2)
                outs.append(h2)
                h2_bf = h2.astype(bf16)
            if t < t_len:
                # layer-1 step t (independent of this iteration's layer-2 block)
                z1 = gx1_t[t] + jnp.dot(h1_bf, wh1, preferred_element_type=f32)
                i1, f1, g1, o1 = gates(z1)
                c1 = f1 * c1 + i1 * g1
                h1_bf = (o1 * jnp.tanh(c1)).astype(bf16)

        # ---- gather hidden sequence (register-resident) into batch-major rows
        lstm_out = jnp.concatenate(
            [jnp.concatenate([outs[t][b:b + 1, :] for t in range(t_len)], axis=0)
             for b in range(bsz)], axis=0)                            # (n, H)

        # ---- fused heads: relu -> [post_fc1|post_fc2] -> relu -> blkdiag heads
        y = _leaky(lstm_out)
        h12 = _leaky(jnp.dot(y.astype(bf16), w12,
                             preferred_element_type=f32) + b12)
        out2 = jnp.dot(h12.astype(bf16), wout,
                       preferred_element_type=f32) + bout             # (n, 2)
        q_ref[...] = out2[:, 0:1]                                     # q_values
        qe_ref[...] = out2[:, 1:2]                                    # q_estimate

    return kernel


# ------------------------------ parameters -----------------------------------
def init_params(key):
    def uniform(k, shape, bound):
        return jax.random.uniform(k, shape, jnp.float32, -bound, bound)

    keys = iter(jax.random.split(key, 32))
    F, H, A = FEAT, HIDDEN, ACT_EMB
    hh = H // 2

    # FiLM: Linear(action_embedding_dim -> 2*feature_size), [gamma | beta] lanes.
    kb_a = 1.0 / math.sqrt(A)
    film_w = uniform(next(keys), (A, 2 * F), kb_a)
    film_b = uniform(next(keys), (1, 2 * F), kb_a)

    # LSTM layers, gate-fused (., 4H), PyTorch gate order i|f|g|o, b_ih+b_hh fused.
    kb_h = 1.0 / math.sqrt(H)
    wx1 = uniform(next(keys), (F, 4 * H), kb_h)
    wh1 = uniform(next(keys), (H, 4 * H), kb_h)
    b1 = uniform(next(keys), (1, 4 * H), kb_h) + uniform(next(keys), (1, 4 * H), kb_h)
    wx2 = uniform(next(keys), (H, 4 * H), kb_h)
    wh2 = uniform(next(keys), (H, 4 * H), kb_h)
    b2 = uniform(next(keys), (1, 4 * H), kb_h) + uniform(next(keys), (1, 4 * H), kb_h)

    # Heads: post_fc1|post_fc2 fused along lanes; linear|aux as block-diagonal.
    kb_hh = 1.0 / math.sqrt(hh)
    w12 = jnp.concatenate([uniform(next(keys), (H, hh), kb_h),
                           uniform(next(keys), (H, hh), kb_h)], axis=1)   # (H, 2hh)
    b12 = jnp.concatenate([uniform(next(keys), (1, hh), kb_h),
                           uniform(next(keys), (1, hh), kb_h)], axis=1)   # (1, 2hh)
    wl = uniform(next(keys), (hh, 1), kb_hh)
    wa = uniform(next(keys), (hh, 1), kb_hh)
    bl = uniform(next(keys), (1, 1), kb_hh)
    ba = uniform(next(keys), (1, 1), kb_hh)
    zcol = jnp.zeros((hh, 1), jnp.float32)
    wout = jnp.concatenate([jnp.concatenate([wl, zcol], axis=0),
                            jnp.concatenate([zcol, wa], axis=0)], axis=1)  # (2hh, 2)
    bout = jnp.concatenate([bl, ba], axis=1)                               # (1, 2)

    # ---- pack into 3 lane-dense operand slabs (16-row-aligned sub-blocks) ----
    w_lstm = jnp.zeros((128, 4 * H), jnp.float32)
    w_lstm = w_lstm.at[0:F, :].set(wx1)            # rows   0:16  Wx1
    w_lstm = w_lstm.at[16:16 + H, :].set(wh1)      # rows  16:48  Wh1
    w_lstm = w_lstm.at[48:48 + H, :].set(wx2)      # rows  48:80  Wx2 \ combined
    w_lstm = w_lstm.at[80:80 + H, :].set(wh2)      # rows  80:112 Wh2 / [Wx2;Wh2]

    w_small = jnp.zeros((80, 2 * F), jnp.float32)
    w_small = w_small.at[0:A, :].set(film_w)               # rows  0:6
    w_small = w_small.at[16:16 + H, 0:2 * hh].set(w12)     # rows 16:48
    w_small = w_small.at[48:48 + H, 0:2].set(wout)         # rows 48:80

    biases = jnp.zeros((8, 4 * H), jnp.float32)
    biases = biases.at[0, 0:2 * F].set(film_b[0])
    biases = biases.at[1, :].set(b1[0])
    biases = biases.at[2, :].set(b2[0])
    biases = biases.at[3, 0:2 * hh].set(b12[0])
    biases = biases.at[4, 0:2].set(bout[0])

    return {"w_lstm": w_lstm.astype(jnp.bfloat16),
            "w_small": w_small.astype(jnp.bfloat16),
            "biases": biases}


# ------------------------------ full forward ----------------------------------
def rrlstm_forward(params, states, action, train_len):
    # train_len is only consumed by the SelfAttentionForRL branch of the
    # reference module (is_lstm=False); the LSTM branch ignores it.
    # TODO(synk): SelfAttentionForRL branch (is_lstm=False) is not implemented.
    del train_len
    bsz, seq, feat = states.shape
    n = bsz * seq

    # Free (contiguous) reshapes only -- no transpose / one_hot / slice glue.
    states_flat = states.reshape(n, feat).astype(jnp.float32)
    action_flat = action.reshape(n, 1).astype(jnp.int32)

    flops = 2 * n * (ACT_EMB * 2 * FEAT            # FiLM one-hot matmul
                     + FEAT * 4 * HIDDEN           # layer-1 input projection
                     + HIDDEN * 4 * HIDDEN         # layer-1 recurrent matmuls
                     + 2 * HIDDEN * 4 * HIDDEN     # layer-2 combined matmuls
                     + HIDDEN * HIDDEN             # fused post_fc1|post_fc2
                     + HIDDEN * 2)                 # fused linear|aux heads
    transcendentals = 6 * n * 4 * HIDDEN
    bytes_accessed = (states_flat.size * 4 + action_flat.size * 4
                      + params["w_lstm"].size * 2 + params["w_small"].size * 2
                      + params["biases"].size * 4 + 2 * n * 4)

    vmem_spec = pl.BlockSpec(memory_space=pltpu.MemorySpace.VMEM)
    q, qe = pl.pallas_call(
        make_fused_kernel(seq, bsz, HIDDEN, feat, ACT_EMB),
        out_shape=(jax.ShapeDtypeStruct((n, 1), jnp.float32),
                   jax.ShapeDtypeStruct((n, 1), jnp.float32)),
        in_specs=[vmem_spec] * 5,
        out_specs=(vmem_spec, vmem_spec),
        cost_estimate=pl.CostEstimate(flops=flops,
                                      transcendentals=transcendentals,
                                      bytes_accessed=bytes_accessed),
    )(states_flat, action_flat,
      params["w_lstm"], params["w_small"], params["biases"])

    # Kernel rows are batch-major (row = b*T + t) -> free reshapes only.
    q_values = q.reshape(bsz, seq, 1)
    q_estimate = qe.reshape(bsz, seq, 1)
    return q_values, q_estimate, None


if __name__ == "__main__":
    key = jax.random.PRNGKey(0)
    kp, ks, ka = jax.random.split(key, 3)

    params = init_params(kp)
    states = jax.random.normal(ks, (B, T, FEAT), dtype=jnp.float32)
    action = jax.random.randint(ka, (B, T), 0, N_ACTIONS)
    train_len = jnp.full((B,), T, dtype=jnp.int32)

    fwd = jax.jit(rrlstm_forward)
    q_values, q_estimate, attn = fwd(params, states, action, train_len)
    jax.block_until_ready((q_values, q_estimate))

    assert q_values.shape == (B, T, 1) and q_estimate.shape == (B, T, 1)
    assert attn is None
    print("KERNEL_OK")
</pallas_src>

<mosaic_0001>
module attributes {stable_mosaic.version = 11 : i64} {
  func.func @kernel(%arg0: memref<16x16xf32, #tpu.memory_space<vmem>>, %arg1: memref<16x1xi32, #tpu.memory_space<vmem>>, %arg2: memref<128x128xbf16, #tpu.memory_space<vmem>>, %arg3: memref<80x32xbf16, #tpu.memory_space<vmem>>, %arg4: memref<8x128xf32, #tpu.memory_space<vmem>>, %arg5: memref<16x1xf32, #tpu.memory_space<vmem>>, %arg6: memref<16x1xf32, #tpu.memory_space<vmem>>) attributes {dimension_semantics = [], scalar_prefetch = 0 : i64, scratch_operands = 0 : i64, tpu.core_type = #tpu.core_type<tc>} {
    %c0 = arith.constant 0 : index
    %c0_0 = arith.constant 0 : index
    %0 = vector.load %arg2[%c0, %c0_0] : memref<128x128xbf16, #tpu.memory_space<vmem>>, vector<16x128xbf16>
    %c16 = arith.constant 16 : index
    %c0_1 = arith.constant 0 : index
    %1 = vector.load %arg2[%c16, %c0_1] : memref<128x128xbf16, #tpu.memory_space<vmem>>, vector<32x128xbf16>
    %c48 = arith.constant 48 : index
    %c0_2 = arith.constant 0 : index
    %2 = vector.load %arg2[%c48, %c0_2] : memref<128x128xbf16, #tpu.memory_space<vmem>>, vector<64x128xbf16>
    %c0_3 = arith.constant 0 : index
    %c0_4 = arith.constant 0 : index
    %3 = vector.load %arg3[%c0_3, %c0_4] : memref<80x32xbf16, #tpu.memory_space<vmem>>, vector<6x32xbf16>
    %c16_5 = arith.constant 16 : index
    %c0_6 = arith.constant 0 : index
    %4 = vector.load %arg3[%c16_5, %c0_6] : memref<80x32xbf16, #tpu.memory_space<vmem>>, vector<32x32xbf16>
    %c48_7 = arith.constant 48 : index
    %c0_8 = arith.constant 0 : index
    %5 = vector.load %arg3[%c48_7, %c0_8] : memref<80x32xbf16, #tpu.memory_space<vmem>>, vector<32x2xbf16>
    %c0_9 = arith.constant 0 : index
    %c0_10 = arith.constant 0 : index
    %6 = vector.load %arg4[%c0_9, %c0_10] : memref<8x128xf32, #tpu.memory_space<vmem>>, vector<1x32xf32>
    %c1 = arith.constant 1 : index
    %c0_11 = arith.constant 0 : index
    %7 = vector.load %arg4[%c1, %c0_11] : memref<8x128xf32, #tpu.memory_space<vmem>>, vector<1x128xf32>
    %c2 = arith.constant 2 : index
    %c0_12 = arith.constant 0 : index
    %8 = vector.load %arg4[%c2, %c0_12] : memref<8x128xf32, #tpu.memory_space<vmem>>, vector<1x128xf32>
    %c3 = arith.constant 3 : index
    %c0_13 = arith.constant 0 : index
    %9 = vector.load %arg4[%c3, %c0_13] : memref<8x128xf32, #tpu.memory_space<vmem>>, vector<1x32xf32>
    %c4 = arith.constant 4 : index
    %c0_14 = arith.constant 0 : index
    %10 = vector.load %arg4[%c4, %c0_14] : memref<8x128xf32, #tpu.memory_space<vmem>>, vector<1x2xf32>
    %c0_15 = arith.constant 0 : index
    %c0_16 = arith.constant 0 : index
    %11 = vector.load %arg1[%c0_15, %c0_16] : memref<16x1xi32, #tpu.memory_space<vmem>>, vector<16x1xi32>
    %12 = tpu.iota {dimensions = array<i32: 1>} : vector<16x6xi32>
    %13 = vector.broadcast %11 : vector<16x1xi32> to vector<16x6xi32>
    %14 = arith.cmpi eq, %13, %12 : vector<16x6xi32>
    %cst = arith.constant 1.000000e+00 : f32
    %cst_17 = arith.constant 0.000000e+00 : f32
    %15 = vector.broadcast %cst : f32 to vector<16x6xf32>
    %16 = vector.broadcast %cst_17 : f32 to vector<16x6xf32>
    %17 = arith.select %14, %15, %16 : vector<16x6xi1>, vector<16x6xf32>
    %18 = arith.truncf %17 : vector<16x6xf32> to vector<16x6xbf16>
    %cst_18 = arith.constant dense<0.000000e+00> : vector<16x32xf32>
    %19 = tpu.matmul %18, %3, %cst_18 {dimension_numbers = #tpu.dot_dimension_numbers<[1], [0], [0], [1], [0, 0, 1, 1], [], []>} : vector<16x6xbf16>, vector<6x32xbf16>, vector<16x32xf32> -> vector<16x32xf32>
    %20 = vector.broadcast %6 : vector<1x32xf32> to vector<16x32xf32>
    %21 = arith.addf %19, %20 : vector<16x32xf32>
    %22 = vector.extract_strided_slice %21 {offsets = [0, 0], sizes = [16, 16], strides = [1, 1]} : vector<16x32xf32> to vector<16x16xf32>
    %23 = vector.extract_strided_slice %21 {offsets = [0, 16], sizes = [16, 16], strides = [1, 1]} : vector<16x32xf32> to vector<16x16xf32>
    %c0_19 = arith.constant 0 : index
    %c0_20 = arith.constant 0 : index
    %24 = vector.load %arg0[%c0_19, %c0_20] : memref<16x16xf32, #tpu.memory_space<vmem>>, vector<16x16xf32>
    %25 = arith.mulf %22, %24 : vector<16x16xf32>
    %26 = arith.addf %25, %23 : vector<16x16xf32>
    %27 = arith.truncf %26 : vector<16x16xf32> to vector<16x16xbf16>
    %cst_21 = arith.constant dense<0.000000e+00> : vector<16x128xf32>
    %28 = tpu.matmul %27, %0, %cst_21 {dimension_numbers = #tpu.dot_dimension_numbers<[1], [0], [0], [1], [0, 0, 1, 1], [], []>} : vector<16x16xbf16>, vector<16x128xbf16>, vector<16x128xf32> -> vector<16x128xf32>
    %29 = vector.broadcast %7 : vector<1x128xf32> to vector<16x128xf32>
    %30 = arith.addf %28, %29 : vector<16x128xf32>
    %31 = vector.extract_strided_slice %30 {offsets = [0, 0], sizes = [1, 128], strides = [1, 1]} : vector<16x128xf32> to vector<1x128xf32>
    %32 = vector.extract_strided_slice %30 {offsets = [8, 0], sizes = [1, 128], strides = [1, 1]} : vector<16x128xf32> to vector<1x128xf32>
    %33 = tpu.concatenate %31, %32 in 0 : vector<1x128xf32>, vector<1x128xf32> -> vector<2x128xf32>
    %34 = vector.extract_strided_slice %30 {offsets = [1, 0], sizes = [1, 128], strides = [1, 1]} : vector<16x128xf32> to vector<1x128xf32>
    %35 = vector.extract_strided_slice %30 {offsets = [9, 0], sizes = [1, 128], strides = [1, 1]} : vector<16x128xf32> to vector<1x128xf32>
    %36 = tpu.concatenate %34, %35 in 0 : vector<1x128xf32>, vector<1x128xf32> -> vector<2x128xf32>
    %37 = vector.extract_strided_slice %30 {offsets = [2, 0], sizes = [1, 128], strides = [1, 1]} : vector<16x128xf32> to vector<1x128xf32>
    %38 = vector.extract_strided_slice %30 {offsets = [10, 0], sizes = [1, 128], strides = [1, 1]} : vector<16x128xf32> to vector<1x128xf32>
    %39 = tpu.concatenate %37, %38 in 0 : vector<1x128xf32>, vector<1x128xf32> -> vector<2x128xf32>
    %40 = vector.extract_strided_slice %30 {offsets = [3, 0], sizes = [1, 128], strides = [1, 1]} : vector<16x128xf32> to vector<1x128xf32>
    %41 = vector.extract_strided_slice %30 {offsets = [11, 0], sizes = [1, 128], strides = [1, 1]} : vector<16x128xf32> to vector<1x128xf32>
    %42 = tpu.concatenate %40, %41 in 0 : vector<1x128xf32>, vector<1x128xf32> -> vector<2x128xf32>
    %43 = vector.extract_strided_slice %30 {offsets = [4, 0], sizes = [1, 128], strides = [1, 1]} : vector<16x128xf32> to vector<1x128xf32>
    %44 = vector.extract_strided_slice %30 {offsets = [12, 0], sizes = [1, 128], strides = [1, 1]} : vector<16x128xf32> to vector<1x128xf32>
    %45 = tpu.concatenate %43, %44 in 0 : vector<1x128xf32>, vector<1x128xf32> -> vector<2x128xf32>
    %46 = vector.extract_strided_slice %30 {offsets = [5, 0], sizes = [1, 128], strides = [1, 1]} : vector<16x128xf32> to vector<1x128xf32>
    %47 = vector.extract_strided_slice %30 {offsets = [13, 0], sizes = [1, 128], strides = [1, 1]} : vector<16x128xf32> to vector<1x128xf32>
    %48 = tpu.concatenate %46, %47 in 0 : vector<1x128xf32>, vector<1x128xf32> -> vector<2x128xf32>
    %49 = vector.extract_strided_slice %30 {offsets = [6, 0], sizes = [1, 128], strides = [1, 1]} : vector<16x128xf32> to vector<1x128xf32>
    %50 = vector.extract_strided_slice %30 {offsets = [14, 0], sizes = [1, 128], strides = [1, 1]} : vector<16x128xf32> to vector<1x128xf32>
    %51 = tpu.concatenate %49, %50 in 0 : vector<1x128xf32>, vector<1x128xf32> -> vector<2x128xf32>
    %52 = vector.extract_strided_slice %30 {offsets = [7, 0], sizes = [1, 128], strides = [1, 1]} : vector<16x128xf32> to vector<1x128xf32>
    %53 = vector.extract_strided_slice %30 {offsets = [15, 0], sizes = [1, 128], strides = [1, 1]} : vector<16x128xf32> to vector<1x128xf32>
    %54 = tpu.concatenate %52, %53 in 0 : vector<1x128xf32>, vector<1x128xf32> -> vector<2x128xf32>
    %cst_22 = arith.constant 0.000000e+00 : bf16
    %55 = vector.broadcast %cst_22 : bf16 to vector<2x32xbf16>
    %cst_23 = arith.constant 0.000000e+00 : bf16
    %56 = vector.broadcast %cst_23 : bf16 to vector<2x32xbf16>
    %cst_24 = arith.constant 0.000000e+00 : f32
    %57 = vector.broadcast %cst_24 : f32 to vector<2x32xf32>
    %cst_25 = arith.constant 0.000000e+00 : f32
    %58 = vector.broadcast %cst_25 : f32 to vector<2x32xf32>
    %cst_26 = arith.constant dense<0.000000e+00> : vector<2x128xf32>
    %59 = tpu.matmul %55, %1, %cst_26 {dimension_numbers = #tpu.dot_dimension_numbers<[1], [0], [0], [1], [0, 0, 1, 1], [], []>} : vector<2x32xbf16>, vector<32x128xbf16>, vector<2x128xf32> -> vector<2x128xf32>
    %60 = arith.addf %33, %59 : vector<2x128xf32>
    %61 = arith.negf %60 : vector<2x128xf32>
    %62 = math.exp %61 : vector<2x128xf32>
    %cst_27 = arith.constant 1.000000e+00 : f32
    %63 = vector.broadcast %cst_27 : f32 to vector<2x128xf32>
    %64 = arith.addf %63, %62 : vector<2x128xf32>
    %65 = arith.divf %63, %64 : vector<2x128xf32>
    %66 = math.tanh %60 : vector<2x128xf32>
    %67 = vector.extract_strided_slice %65 {offsets = [0, 0], sizes = [2, 32], strides = [1, 1]} : vector<2x128xf32> to vector<2x32xf32>
    %68 = vector.extract_strided_slice %65 {offsets = [0, 32], sizes = [2, 32], strides = [1, 1]} : vector<2x128xf32> to vector<2x32xf32>
    %69 = vector.extract_strided_slice %66 {offsets = [0, 64], sizes = [2, 32], strides = [1, 1]} : vector<2x128xf32> to vector<2x32xf32>
    %70 = vector.extract_strided_slice %65 {offsets = [0, 96], sizes = [2, 32], strides = [1, 1]} : vector<2x128xf32> to vector<2x32xf32>
    %71 = arith.mulf %68, %57 : vector<2x32xf32>
    %72 = arith.mulf %67, %69 : vector<2x32xf32>
    %73 = arith.addf %71, %72 : vector<2x32xf32>
    %74 = math.tanh %73 : vector<2x32xf32>
    %75 = arith.mulf %70, %74 : vector<2x32xf32>
    %76 = arith.truncf %75 : vector<2x32xf32> to vector<2x32xbf16>
    %77 = tpu.concatenate %76, %56 in 1 : vector<2x32xbf16>, vector<2x32xbf16> -> vector<2x64xbf16>
    %cst_28 = arith.constant dense<0.000000e+00> : vector<2x128xf32>
    %78 = tpu.matmul %77, %2, %cst_28 {dimension_numbers = #tpu.dot_dimension_numbers<[1], [0], [0], [1], [0, 0, 1, 1], [], []>} : vector<2x64xbf16>, vector<64x128xbf16>, vector<2x128xf32> -> vector<2x128xf32>
    %79 = vector.broadcast %8 : vector<1x128xf32> to vector<2x128xf32>
    %80 = arith.addf %78, %79 : vector<2x128xf32>
    %81 = arith.negf %80 : vector<2x128xf32>
    %82 = math.exp %81 : vector<2x128xf32>
    %cst_29 = arith.constant 1.000000e+00 : f32
    %83 = vector.broadcast %cst_29 : f32 to vector<2x128xf32>
    %84 = arith.addf %83, %82 : vector<2x128xf32>
    %85 = arith.divf %83, %84 : vector<2x128xf32>
    %86 = math.tanh %80 : vector<2x128xf32>
    %87 = vector.extract_strided_slice %85 {offsets = [0, 0], sizes = [2, 32], strides = [1, 1]} : vector<2x128xf32> to vector<2x32xf32>
    %88 = vector.extract_strided_slice %85 {offsets = [0, 32], sizes = [2, 32], strides = [1, 1]} : vector<2x128xf32> to vector<2x32xf32>
    %89 = vector.extract_strided_slice %86 {offsets = [0, 64], sizes = [2, 32], strides = [1, 1]} : vector<2x128xf32> to vector<2x32xf32>
    %90 = vector.extract_strided_slice %85 {offsets = [0, 96], sizes = [2, 32], strides = [1, 1]} : vector<2x128xf32> to vector<2x32xf32>
    %91 = arith.mulf %88, %58 : vector<2x32xf32>
    %92 = arith.mulf %87, %89 : vector<2x32xf32>
    %93 = arith.addf %91, %92 : vector<2x32xf32>
    %94 = math.tanh %93 : vector<2x32xf32>
    %95 = arith.mulf %90, %94 : vector<2x32xf32>
    %96 = arith.truncf %95 : vector<2x32xf32> to vector<2x32xbf16>
    %cst_30 = arith.constant dense<0.000000e+00> : vector<2x128xf32>
    %97 = tpu.matmul %76, %1, %cst_30 {dimension_numbers = #tpu.dot_dimension_numbers<[1], [0], [0], [1], [0, 0, 1, 1], [], []>} : vector<2x32xbf16>, vector<32x128xbf16>, vector<2x128xf32> -> vector<2x128xf32>
    %98 = arith.addf %36, %97 : vector<2x128xf32>
    %99 = arith.negf %98 : vector<2x128xf32>
    %100 = math.exp %99 : vector<2x128xf32>
    %cst_31 = arith.constant 1.000000e+00 : f32
    %101 = vector.broadcast %cst_31 : f32 to vector<2x128xf32>
    %102 = arith.addf %101, %100 : vector<2x128xf32>
    %103 = arith.divf %101, %102 : vector<2x128xf32>
    %104 = math.tanh %98 : vector<2x128xf32>
    %105 = vector.extract_strided_slice %103 {offsets = [0, 0], sizes = [2, 32], strides = [1, 1]} : vector<2x128xf32> to vector<2x32xf32>
    %106 = vector.extract_strided_slice %103 {offsets = [0, 32], sizes = [2, 32], strides = [1, 1]} : vector<2x128xf32> to vector<2x32xf32>
    %107 = vector.extract_strided_slice %104 {offsets = [0, 64], sizes = [2, 32], strides = [1, 1]} : vector<2x128xf32> to vector<2x32xf32>
    %108 = vector.extract_strided_slice %103 {offsets = [0, 96], sizes = [2, 32], strides = [1, 1]} : vector<2x128xf32> to vector<2x32xf32>
    %109 = arith.mulf %106, %73 : vector<2x32xf32>
    %110 = arith.mulf %105, %107 : vector<2x32xf32>
    %111 = arith.addf %109, %110 : vector<2x32xf32>
    %112 = math.tanh %111 : vector<2x32xf32>
    %113 = arith.mulf %108, %112 : vector<2x32xf32>
    %114 = arith.truncf %113 : vector<2x32xf32> to vector<2x32xbf16>
    %115 = tpu.concatenate %114, %96 in 1 : vector<2x32xbf16>, vector<2x32xbf16> -> vector<2x64xbf16>
    %cst_32 = arith.constant dense<0.000000e+00> : vector<2x128xf32>
    %116 = tpu.matmul %115, %2, %cst_32 {dimension_numbers = #tpu.dot_dimension_numbers<[1], [0], [0], [1], [0, 0, 1, 1], [], []>} : vector<2x64xbf16>, vector<64x128xbf16>, vector<2x128xf32> -> vector<2x128xf32>
    %117 = vector.broadcast %8 : vector<1x128xf32> to vector<2x128xf32>
    %118 = arith.addf %116, %117 : vector<2x128xf32>
    %119 = arith.negf %118 : vector<2x128xf32>
    %120 = math.exp %119 : vector<2x128xf32>
    %cst_33 = arith.constant 1.000000e+00 : f32
    %121 = vector.broadcast %cst_33 : f32 to vector<2x128xf32>
    %122 = arith.addf %121, %120 : vector<2x128xf32>
    %123 = arith.divf %121, %122 : vector<2x128xf32>
    %124 = math.tanh %118 : vector<2x128xf32>
    %125 = vector.extract_strided_slice %123 {offsets = [0, 0], sizes = [2, 32], strides = [1, 1]} : vector<2x128xf32> to vector<2x32xf32>
    %126 = vector.extract_strided_slice %123 {offsets = [0, 32], sizes = [2, 32], strides = [1, 1]} : vector<2x128xf32> to vector<2x32xf32>
    %127 = vector.extract_strided_slice %124 {offsets = [0, 64], sizes = [2, 32], strides = [1, 1]} : vector<2x128xf32> to vector<2x32xf32>
    %128 = vector.extract_strided_slice %123 {offsets = [0, 96], sizes = [2, 32], strides = [1, 1]} : vector<2x128xf32> to vector<2x32xf32>
    %129 = arith.mulf %126, %93 : vector<2x32xf32>
    %130 = arith.mulf %125, %127 : vector<2x32xf32>
    %131 = arith.addf %129, %130 : vector<2x32xf32>
    %132 = math.tanh %131 : vector<2x32xf32>
    %133 = arith.mulf %128, %132 : vector<2x32xf32>
    %134 = arith.truncf %133 : vector<2x32xf32> to vector<2x32xbf16>
    %cst_34 = arith.constant dense<0.000000e+00> : vector<2x128xf32>
    %135 = tpu.matmul %114, %1, %cst_34 {dimension_numbers = #tpu.dot_dimension_numbers<[1], [0], [0], [1], [0, 0, 1, 1], [], []>} : vector<2x32xbf16>, vector<32x128xbf16>, vector<2x128xf32> -> vector<2x128xf32>
    %136 = arith.addf %39, %135 : vector<2x128xf32>
    %137 = arith.negf %136 : vector<2x128xf32>
    %138 = math.exp %137 : vector<2x128xf32>
    %cst_35 = arith.constant 1.000000e+00 : f32
    %139 = vector.broadcast %cst_35 : f32 to vector<2x128xf32>
    %140 = arith.addf %139, %138 : vector<2x128xf32>
    %141 = arith.divf %139, %140 : vector<2x128xf32>
    %142 = math.tanh %136 : vector<2x128xf32>
    %143 = vector.extract_strided_slice %141 {offsets = [0, 0], sizes = [2, 32], strides = [1, 1]} : vector<2x128xf32> to vector<2x32xf32>
    %144 = vector.extract_strided_slice %141 {offsets = [0, 32], sizes = [2, 32], strides = [1, 1]} : vector<2x128xf32> to vector<2x32xf32>
    %145 = vector.extract_strided_slice %142 {offsets = [0, 64], sizes = [2, 32], strides = [1, 1]} : vector<2x128xf32> to vector<2x32xf32>
    %146 = vector.extract_strided_slice %141 {offsets = [0, 96], sizes = [2, 32], strides = [1, 1]} : vector<2x128xf32> to vector<2x32xf32>
    %147 = arith.mulf %144, %111 : vector<2x32xf32>
    %148 = arith.mulf %143, %145 : vector<2x32xf32>
    %149 = arith.addf %147, %148 : vector<2x32xf32>
    %150 = math.tanh %149 : vector<2x32xf32>
    %151 = arith.mulf %146, %150 : vector<2x32xf32>
    %152 = arith.truncf %151 : vector<2x32xf32> to vector<2x32xbf16>
    %153 = tpu.concatenate %152, %134 in 1 : vector<2x32xbf16>, vector<2x32xbf16> -> vector<2x64xbf16>
    %cst_36 = arith.constant dense<0.000000e+00> : vector<2x128xf32>
    %154 = tpu.matmul %153, %2, %cst_36 {dimension_numbers = #tpu.dot_dimension_numbers<[1], [0], [0], [1], [0, 0, 1, 1], [], []>} : vector<2x64xbf16>, vector<64x128xbf16>, vector<2x128xf32> -> vector<2x128xf32>
    %155 = vector.broadcast %8 : vector<1x128xf32> to vector<2x128xf32>
    %156 = arith.addf %154, %155 : vector<2x128xf32>
    %157 = arith.negf %156 : vector<2x128xf32>
    %158 = math.exp %157 : vector<2x128xf32>
    %cst_37 = arith.constant 1.000000e+00 : f32
    %159 = vector.broadcast %cst_37 : f32 to vector<2x128xf32>
    %160 = arith.addf %159, %158 : vector<2x128xf32>
    %161 = arith.divf %159, %160 : vector<2x128xf32>
    %162 = math.tanh %156 : vector<2x128xf32>
    %163 = vector.extract_strided_slice %161 {offsets = [0, 0], sizes = [2, 32], strides = [1, 1]} : vector<2x128xf32> to vector<2x32xf32>
    %164 = vector.extract_strided_slice %161 {offsets = [0, 32], sizes = [2, 32], strides = [1, 1]} : vector<2x128xf32> to vector<2x32xf32>
    %165 = vector.extract_strided_slice %162 {offsets = [0, 64], sizes = [2, 32], strides = [1, 1]} : vector<2x128xf32> to vector<2x32xf32>
    %166 = vector.extract_strided_slice %161 {offsets = [0, 96], sizes = [2, 32], strides = [1, 1]} : vector<2x128xf32> to vector<2x32xf32>
    %167 = arith.mulf %164, %131 : vector<2x32xf32>
    %168 = arith.mulf %163, %165 : vector<2x32xf32>
    %169 = arith.addf %167, %168 : vector<2x32xf32>
    %170 = math.tanh %169 : vector<2x32xf32>
    %171 = arith.mulf %166, %170 : vector<2x32xf32>
    %172 = arith.truncf %171 : vector<2x32xf32> to vector<2x32xbf16>
    %cst_38 = arith.constant dense<0.000000e+00> : vector<2x128xf32>
    %173 = tpu.matmul %152, %1, %cst_38 {dimension_numbers = #tpu.dot_dimension_numbers<[1], [0], [0], [1], [0, 0, 1, 1], [], []>} : vector<2x32xbf16>, vector<32x128xbf16>, vector<2x128xf32> -> vector<2x128xf32>
    %174 = arith.addf %42, %173 : vector<2x128xf32>
    %175 = arith.negf %174 : vector<2x128xf32>
    %176 = math.exp %175 : vector<2x128xf32>
    %cst_39 = arith.constant 1.000000e+00 : f32
    %177 = vector.broadcast %cst_39 : f32 to vector<2x128xf32>
    %178 = arith.addf %177, %176 : vector<2x128xf32>
    %179 = arith.divf %177, %178 : vector<2x128xf32>
    %180 = math.tanh %174 : vector<2x128xf32>
    %181 = vector.extract_strided_slice %179 {offsets = [0, 0], sizes = [2, 32], strides = [1, 1]} : vector<2x128xf32> to vector<2x32xf32>
    %182 = vector.extract_strided_slice %179 {offsets = [0, 32], sizes = [2, 32], strides = [1, 1]} : vector<2x128xf32> to vector<2x32xf32>
    %183 = vector.extract_strided_slice %180 {offsets = [0, 64], sizes = [2, 32], strides = [1, 1]} : vector<2x128xf32> to vector<2x32xf32>
    %184 = vector.extract_strided_slice %179 {offsets = [0, 96], sizes = [2, 32], strides = [1, 1]} : vector<2x128xf32> to vector<2x32xf32>
    %185 = arith.mulf %182, %149 : vector<2x32xf32>
    %186 = arith.mulf %181, %183 : vector<2x32xf32>
    %187 = arith.addf %185, %186 : vector<2x32xf32>
    %188 = math.tanh %187 : vector<2x32xf32>
    %189 = arith.mulf %184, %188 : vector<2x32xf32>
    %190 = arith.truncf %189 : vector<2x32xf32> to vector<2x32xbf16>
    %191 = tpu.concatenate %190, %172 in 1 : vector<2x32xbf16>, vector<2x32xbf16> -> vector<2x64xbf16>
    %cst_40 = arith.constant dense<0.000000e+00> : vector<2x128xf32>
    %192 = tpu.matmul %191, %2, %cst_40 {dimension_numbers = #tpu.dot_dimension_numbers<[1], [0], [0], [1], [0, 0, 1, 1], [], []>} : vector<2x64xbf16>, vector<64x128xbf16>, vector<2x128xf32> -> vector<2x128xf32>
    %193 = vector.broadcast %8 : vector<1x128xf32> to vector<2x128xf32>
    %194 = arith.addf %192, %193 : vector<2x128xf32>
    %195 = arith.negf %194 : vector<2x128xf32>
    %196 = math.exp %195 : vector<2x128xf32>
    %cst_41 = arith.constant 1.000000e+00 : f32
    %197 = vector.broadcast %cst_41 : f32 to vector<2x128xf32>
    %198 = arith.addf %197, %196 : vector<2x128xf32>
    %199 = arith.divf %197, %198 : vector<2x128xf32>
    %200 = math.tanh %194 : vector<2x128xf32>
    %201 = vector.extract_strided_slice %199 {offsets = [0, 0], sizes = [2, 32], strides = [1, 1]} : vector<2x128xf32> to vector<2x32xf32>
    %202 = vector.extract_strided_slice %199 {offsets = [0, 32], sizes = [2, 32], strides = [1, 1]} : vector<2x128xf32> to vector<2x32xf32>
    %203 = vector.extract_strided_slice %200 {offsets = [0, 64], sizes = [2, 32], strides = [1, 1]} : vector<2x128xf32> to vector<2x32xf32>
    %204 = vector.extract_strided_slice %199 {offsets = [0, 96], sizes = [2, 32], strides = [1, 1]} : vector<2x128xf32> to vector<2x32xf32>
    %205 = arith.mulf %202, %169 : vector<2x32xf32>
    %206 = arith.mulf %201, %203 : vector<2x32xf32>
    %207 = arith.addf %205, %206 : vector<2x32xf32>
    %208 = math.tanh %207 : vector<2x32xf32>
    %209 = arith.mulf %204, %208 : vector<2x32xf32>
    %210 = arith.truncf %209 : vector<2x32xf32> to vector<2x32xbf16>
    %cst_42 = arith.constant dense<0.000000e+00> : vector<2x128xf32>
    %211 = tpu.matmul %190, %1, %cst_42 {dimension_numbers = #tpu.dot_dimension_numbers<[1], [0], [0], [1], [0, 0, 1, 1], [], []>} : vector<2x32xbf16>, vector<32x128xbf16>, vector<2x128xf32> -> vector<2x128xf32>
    %212 = arith.addf %45, %211 : vector<2x128xf32>
    %213 = arith.negf %212 : vector<2x128xf32>
    %214 = math.exp %213 : vector<2x128xf32>
    %cst_43 = arith.constant 1.000000e+00 : f32
    %215 = vector.broadcast %cst_43 : f32 to vector<2x128xf32>
    %216 = arith.addf %215, %214 : vector<2x128xf32>
    %217 = arith.divf %215, %216 : vector<2x128xf32>
    %218 = math.tanh %212 : vector<2x128xf32>
    %219 = vector.extract_strided_slice %217 {offsets = [0, 0], sizes = [2, 32], strides = [1, 1]} : vector<2x128xf32> to vector<2x32xf32>
    %220 = vector.extract_strided_slice %217 {offsets = [0, 32], sizes = [2, 32], strides = [1, 1]} : vector<2x128xf32> to vector<2x32xf32>
    %221 = vector.extract_strided_slice %218 {offsets = [0, 64], sizes = [2, 32], strides = [1, 1]} : vector<2x128xf32> to vector<2x32xf32>
    %222 = vector.extract_strided_slice %217 {offsets = [0, 96], sizes = [2, 32], strides = [1, 1]} : vector<2x128xf32> to vector<2x32xf32>
    %223 = arith.mulf %220, %187 : vector<2x32xf32>
    %224 = arith.mulf %219, %221 : vector<2x32xf32>
    %225 = arith.addf %223, %224 : vector<2x32xf32>
    %226 = math.tanh %225 : vector<2x32xf32>
    %227 = arith.mulf %222, %226 : vector<2x32xf32>
    %228 = arith.truncf %227 : vector<2x32xf32> to vector<2x32xbf16>
    %229 = tpu.concatenate %228, %210 in 1 : vector<2x32xbf16>, vector<2x32xbf16> -> vector<2x64xbf16>
    %cst_44 = arith.constant dense<0.000000e+00> : vector<2x128xf32>
    %230 = tpu.matmul %229, %2, %cst_44 {dimension_numbers = #tpu.dot_dimension_numbers<[1], [0], [0], [1], [0, 0, 1, 1], [], []>} : vector<2x64xbf16>, vector<64x128xbf16>, vector<2x128xf32> -> vector<2x128xf32>
    %231 = vector.broadcast %8 : vector<1x128xf32> to vector<2x128xf32>
    %232 = arith.addf %230, %231 : vector<2x128xf32>
    %233 = arith.negf %232 : vector<2x128xf32>
    %234 = math.exp %233 : vector<2x128xf32>
    %cst_45 = arith.constant 1.000000e+00 : f32
    %235 = vector.broadcast %cst_45 : f32 to vector<2x128xf32>
    %236 = arith.addf %235, %234 : vector<2x128xf32>
    %237 = arith.divf %235, %236 : vector<2x128xf32>
    %238 = math.tanh %232 : vector<2x128xf32>
    %239 = vector.extract_strided_slice %237 {offsets = [0, 0], sizes = [2, 32], strides = [1, 1]} : vector<2x128xf32> to vector<2x32xf32>
    %240 = vector.extract_strided_slice %237 {offsets = [0, 32], sizes = [2, 32], strides = [1, 1]} : vector<2x128xf32> to vector<2x32xf32>
    %241 = vector.extract_strided_slice %238 {offsets = [0, 64], sizes = [2, 32], strides = [1, 1]} : vector<2x128xf32> to vector<2x32xf32>
    %242 = vector.extract_strided_slice %237 {offsets = [0, 96], sizes = [2, 32], strides = [1, 1]} : vector<2x128xf32> to vector<2x32xf32>
    %243 = arith.mulf %240, %207 : vector<2x32xf32>
    %244 = arith.mulf %239, %241 : vector<2x32xf32>
    %245 = arith.addf %243, %244 : vector<2x32xf32>
    %246 = math.tanh %245 : vector<2x32xf32>
    %247 = arith.mulf %242, %246 : vector<2x32xf32>
    %248 = arith.truncf %247 : vector<2x32xf32> to vector<2x32xbf16>
    %cst_46 = arith.constant dense<0.000000e+00> : vector<2x128xf32>
    %249 = tpu.matmul %228, %1, %cst_46 {dimension_numbers = #tpu.dot_dimension_numbers<[1], [0], [0], [1], [0, 0, 1, 1], [], []>} : vector<2x32xbf16>, vector<32x128xbf16>, vector<2x128xf32> -> vector<2x128xf32>
    %250 = arith.addf %48, %249 : vector<2x128xf32>
    %251 = arith.negf %250 : vector<2x128xf32>
    %252 = math.exp %251 : vector<2x128xf32>
    %cst_47 = arith.constant 1.000000e+00 : f32
    %253 = vector.broadcast %cst_47 : f32 to vector<2x128xf32>
    %254 = arith.addf %253, %252 : vector<2x128xf32>
    %255 = arith.divf %253, %254 : vector<2x128xf32>
    %256 = math.tanh %250 : vector<2x128xf32>
    %257 = vector.extract_strided_slice %255 {offsets = [0, 0], sizes = [2, 32], strides = [1, 1]} : vector<2x128xf32> to vector<2x32xf32>
    %258 = vector.extract_strided_slice %255 {offsets = [0, 32], sizes = [2, 32], strides = [1, 1]} : vector<2x128xf32> to vector<2x32xf32>
    %259 = vector.extract_strided_slice %256 {offsets = [0, 64], sizes = [2, 32], strides = [1, 1]} : vector<2x128xf32> to vector<2x32xf32>
    %260 = vector.extract_strided_slice %255 {offsets = [0, 96], sizes = [2, 32], strides = [1, 1]} : vector<2x128xf32> to vector<2x32xf32>
    %261 = arith.mulf %258, %225 : vector<2x32xf32>
    %262 = arith.mulf %257, %259 : vector<2x32xf32>
    %263 = arith.addf %261, %262 : vector<2x32xf32>
    %264 = math.tanh %263 : vector<2x32xf32>
    %265 = arith.mulf %260, %264 : vector<2x32xf32>
    %266 = arith.truncf %265 : vector<2x32xf32> to vector<2x32xbf16>
    %267 = tpu.concatenate %266, %248 in 1 : vector<2x32xbf16>, vector<2x32xbf16> -> vector<2x64xbf16>
    %cst_48 = arith.constant dense<0.000000e+00> : vector<2x128xf32>
    %268 = tpu.matmul %267, %2, %cst_48 {dimension_numbers = #tpu.dot_dimension_numbers<[1], [0], [0], [1], [0, 0, 1, 1], [], []>} : vector<2x64xbf16>, vector<64x128xbf16>, vector<2x128xf32> -> vector<2x128xf32>
    %269 = vector.broadcast %8 : vector<1x128xf32> to vector<2x128xf32>
    %270 = arith.addf %268, %269 : vector<2x128xf32>
    %271 = arith.negf %270 : vector<2x128xf32>
    %272 = math.exp %271 : vector<2x128xf32>
    %cst_49 = arith.constant 1.000000e+00 : f32
    %273 = vector.broadcast %cst_49 : f32 to vector<2x128xf32>
    %274 = arith.addf %273, %272 : vector<2x128xf32>
    %275 = arith.divf %273, %274 : vector<2x128xf32>
    %276 = math.tanh %270 : vector<2x128xf32>
    %277 = vector.extract_strided_slice %275 {offsets = [0, 0], sizes = [2, 32], strides = [1, 1]} : vector<2x128xf32> to vector<2x32xf32>
    %278 = vector.extract_strided_slice %275 {offsets = [0, 32], sizes = [2, 32], strides = [1, 1]} : vector<2x128xf32> to vector<2x32xf32>
    %279 = vector.extract_strided_slice %276 {offsets = [0, 64], sizes = [2, 32], strides = [1, 1]} : vector<2x128xf32> to vector<2x32xf32>
    %280 = vector.extract_strided_slice %275 {offsets = [0, 96], sizes = [2, 32], strides = [1, 1]} : vector<2x128xf32> to vector<2x32xf32>
    %281 = arith.mulf %278, %245 : vector<2x32xf32>
    %282 = arith.mulf %277, %279 : vector<2x32xf32>
    %283 = arith.addf %281, %282 : vector<2x32xf32>
    %284 = math.tanh %283 : vector<2x32xf32>
    %285 = arith.mulf %280, %284 : vector<2x32xf32>
    %286 = arith.truncf %285 : vector<2x32xf32> to vector<2x32xbf16>
    %cst_50 = arith.constant dense<0.000000e+00> : vector<2x128xf32>
    %287 = tpu.matmul %266, %1, %cst_50 {dimension_numbers = #tpu.dot_dimension_numbers<[1], [0], [0], [1], [0, 0, 1, 1], [], []>} : vector<2x32xbf16>, vector<32x128xbf16>, vector<2x128xf32> -> vector<2x128xf32>
    %288 = arith.addf %51, %287 : vector<2x128xf32>
    %289 = arith.negf %288 : vector<2x128xf32>
    %290 = math.exp %289 : vector<2x128xf32>
    %cst_51 = arith.constant 1.000000e+00 : f32
    %291 = vector.broadcast %cst_51 : f32 to vector<2x128xf32>
    %292 = arith.addf %291, %290 : vector<2x128xf32>
    %293 = arith.divf %291, %292 : vector<2x128xf32>
    %294 = math.tanh %288 : vector<2x128xf32>
    %295 = vector.extract_strided_slice %293 {offsets = [0, 0], sizes = [2, 32], strides = [1, 1]} : vector<2x128xf32> to vector<2x32xf32>
    %296 = vector.extract_strided_slice %293 {offsets = [0, 32], sizes = [2, 32], strides = [1, 1]} : vector<2x128xf32> to vector<2x32xf32>
    %297 = vector.extract_strided_slice %294 {offsets = [0, 64], sizes = [2, 32], strides = [1, 1]} : vector<2x128xf32> to vector<2x32xf32>
    %298 = vector.extract_strided_slice %293 {offsets = [0, 96], sizes = [2, 32], strides = [1, 1]} : vector<2x128xf32> to vector<2x32xf32>
    %299 = arith.mulf %296, %263 : vector<2x32xf32>
    %300 = arith.mulf %295, %297 : vector<2x32xf32>
    %301 = arith.addf %299, %300 : vector<2x32xf32>
    %302 = math.tanh %301 : vector<2x32xf32>
    %303 = arith.mulf %298, %302 : vector<2x32xf32>
    %304 = arith.truncf %303 : vector<2x32xf32> to vector<2x32xbf16>
    %305 = tpu.concatenate %304, %286 in 1 : vector<2x32xbf16>, vector<2x32xbf16> -> vector<2x64xbf16>
    %cst_52 = arith.constant dense<0.000000e+00> : vector<2x128xf32>
    %306 = tpu.matmul %305, %2, %cst_52 {dimension_numbers = #tpu.dot_dimension_numbers<[1], [0], [0], [1], [0, 0, 1, 1], [], []>} : vector<2x64xbf16>, vector<64x128xbf16>, vector<2x128xf32> -> vector<2x128xf32>
    %307 = vector.broadcast %8 : vector<1x128xf32> to vector<2x128xf32>
    %308 = arith.addf %306, %307 : vector<2x128xf32>
    %309 = arith.negf %308 : vector<2x128xf32>
    %310 = math.exp %309 : vector<2x128xf32>
    %cst_53 = arith.constant 1.000000e+00 : f32
    %311 = vector.broadcast %cst_53 : f32 to vector<2x128xf32>
    %312 = arith.addf %311, %310 : vector<2x128xf32>
    %313 = arith.divf %311, %312 : vector<2x128xf32>
    %314 = math.tanh %308 : vector<2x128xf32>
    %315 = vector.extract_strided_slice %313 {offsets = [0, 0], sizes = [2, 32], strides = [1, 1]} : vector<2x128xf32> to vector<2x32xf32>
    %316 = vector.extract_strided_slice %313 {offsets = [0, 32], sizes = [2, 32], strides = [1, 1]} : vector<2x128xf32> to vector<2x32xf32>
    %317 = vector.extract_strided_slice %314 {offsets = [0, 64], sizes = [2, 32], strides = [1, 1]} : vector<2x128xf32> to vector<2x32xf32>
    %318 = vector.extract_strided_slice %313 {offsets = [0, 96], sizes = [2, 32], strides = [1, 1]} : vector<2x128xf32> to vector<2x32xf32>
    %319 = arith.mulf %316, %283 : vector<2x32xf32>
    %320 = arith.mulf %315, %317 : vector<2x32xf32>
    %321 = arith.addf %319, %320 : vector<2x32xf32>
    %322 = math.tanh %321 : vector<2x32xf32>
    %323 = arith.mulf %318, %322 : vector<2x32xf32>
    %324 = arith.truncf %323 : vector<2x32xf32> to vector<2x32xbf16>
    %cst_54 = arith.constant dense<0.000000e+00> : vector<2x128xf32>
    %325 = tpu.matmul %304, %1, %cst_54 {dimension_numbers = #tpu.dot_dimension_numbers<[1], [0], [0], [1], [0, 0, 1, 1], [], []>} : vector<2x32xbf16>, vector<32x128xbf16>, vector<2x128xf32> -> vector<2x128xf32>
    %326 = arith.addf %54, %325 : vector<2x128xf32>
    %327 = arith.negf %326 : vector<2x128xf32>
    %328 = math.exp %327 : vector<2x128xf32>
    %cst_55 = arith.constant 1.000000e+00 : f32
    %329 = vector.broadcast %cst_55 : f32 to vector<2x128xf32>
    %330 = arith.addf %329, %328 : vector<2x128xf32>
    %331 = arith.divf %329, %330 : vector<2x128xf32>
    %332 = math.tanh %326 : vector<2x128xf32>
    %333 = vector.extract_strided_slice %331 {offsets = [0, 0], sizes = [2, 32], strides = [1, 1]} : vector<2x128xf32> to vector<2x32xf32>
    %334 = vector.extract_strided_slice %331 {offsets = [0, 32], sizes = [2, 32], strides = [1, 1]} : vector<2x128xf32> to vector<2x32xf32>
    %335 = vector.extract_strided_slice %332 {offsets = [0, 64], sizes = [2, 32], strides = [1, 1]} : vector<2x128xf32> to vector<2x32xf32>
    %336 = vector.extract_strided_slice %331 {offsets = [0, 96], sizes = [2, 32], strides = [1, 1]} : vector<2x128xf32> to vector<2x32xf32>
    %337 = arith.mulf %334, %301 : vector<2x32xf32>
    %338 = arith.mulf %333, %335 : vector<2x32xf32>
    %339 = arith.addf %337, %338 : vector<2x32xf32>
    %340 = math.tanh %339 : vector<2x32xf32>
    %341 = arith.mulf %336, %340 : vector<2x32xf32>
    %342 = arith.truncf %341 : vector<2x32xf32> to vector<2x32xbf16>
    %343 = tpu.concatenate %342, %324 in 1 : vector<2x32xbf16>, vector<2x32xbf16> -> vector<2x64xbf16>
    %cst_56 = arith.constant dense<0.000000e+00> : vector<2x128xf32>
    %344 = tpu.matmul %343, %2, %cst_56 {dimension_numbers = #tpu.dot_dimension_numbers<[1], [0], [0], [1], [0, 0, 1, 1], [], []>} : vector<2x64xbf16>, vector<64x128xbf16>, vector<2x128xf32> -> vector<2x128xf32>
    %345 = vector.broadcast %8 : vector<1x128xf32> to vector<2x128xf32>
    %346 = arith.addf %344, %345 : vector<2x128xf32>
    %347 = arith.negf %346 : vector<2x128xf32>
    %348 = math.exp %347 : vector<2x128xf32>
    %cst_57 = arith.constant 1.000000e+00 : f32
    %349 = vector.broadcast %cst_57 : f32 to vector<2x128xf32>
    %350 = arith.addf %349, %348 : vector<2x128xf32>
    %351 = arith.divf %349, %350 : vector<2x128xf32>
    %352 = math.tanh %346 : vector<2x128xf32>
    %353 = vector.extract_strided_slice %351 {offsets = [0, 0], sizes = [2, 32], strides = [1, 1]} : vector<2x128xf32> to vector<2x32xf32>
    %354 = vector.extract_strided_slice %351 {offsets = [0, 32], sizes = [2, 32], strides = [1, 1]} : vector<2x128xf32> to vector<2x32xf32>
    %355 = vector.extract_strided_slice %352 {offsets = [0, 64], sizes = [2, 32], strides = [1, 1]} : vector<2x128xf32> to vector<2x32xf32>
    %356 = vector.extract_strided_slice %351 {offsets = [0, 96], sizes = [2, 32], strides = [1, 1]} : vector<2x128xf32> to vector<2x32xf32>
    %357 = arith.mulf %354, %321 : vector<2x32xf32>
    %358 = arith.mulf %353, %355 : vector<2x32xf32>
    %359 = arith.addf %357, %358 : vector<2x32xf32>
    %360 = math.tanh %359 : vector<2x32xf32>
    %361 = arith.mulf %356, %360 : vector<2x32xf32>
    %362 = vector.extract_strided_slice %95 {offsets = [0, 0], sizes = [1, 32], strides = [1, 1]} : vector<2x32xf32> to vector<1x32xf32>
    %363 = vector.extract_strided_slice %133 {offsets = [0, 0], sizes = [1, 32], strides = [1, 1]} : vector<2x32xf32> to vector<1x32xf32>
    %364 = vector.extract_strided_slice %171 {offsets = [0, 0], sizes = [1, 32], strides = [1, 1]} : vector<2x32xf32> to vector<1x32xf32>
    %365 = vector.extract_strided_slice %209 {offsets = [0, 0], sizes = [1, 32], strides = [1, 1]} : vector<2x32xf32> to vector<1x32xf32>
    %366 = vector.extract_strided_slice %247 {offsets = [0, 0], sizes = [1, 32], strides = [1, 1]} : vector<2x32xf32> to vector<1x32xf32>
    %367 = vector.extract_strided_slice %285 {offsets = [0, 0], sizes = [1, 32], strides = [1, 1]} : vector<2x32xf32> to vector<1x32xf32>
    %368 = vector.extract_strided_slice %323 {offsets = [0, 0], sizes = [1, 32], strides = [1, 1]} : vector<2x32xf32> to vector<1x32xf32>
    %369 = vector.extract_strided_slice %361 {offsets = [0, 0], sizes = [1, 32], strides = [1, 1]} : vector<2x32xf32> to vector<1x32xf32>
    %370 = tpu.concatenate %362, %363, %364, %365, %366, %367, %368, %369 in 0 : vector<1x32xf32>, vector<1x32xf32>, vector<1x32xf32>, vector<1x32xf32>, vector<1x32xf32>, vector<1x32xf32>, vector<1x32xf32>, vector<1x32xf32> -> vector<8x32xf32>
    %371 = vector.extract_strided_slice %95 {offsets = [1, 0], sizes = [1, 32], strides = [1, 1]} : vector<2x32xf32> to vector<1x32xf32>
    %372 = vector.extract_strided_slice %133 {offsets = [1, 0], sizes = [1, 32], strides = [1, 1]} : vector<2x32xf32> to vector<1x32xf32>
    %373 = vector.extract_strided_slice %171 {offsets = [1, 0], sizes = [1, 32], strides = [1, 1]} : vector<2x32xf32> to vector<1x32xf32>
    %374 = vector.extract_strided_slice %209 {offsets = [1, 0], sizes = [1, 32], strides = [1, 1]} : vector<2x32xf32> to vector<1x32xf32>
    %375 = vector.extract_strided_slice %247 {offsets = [1, 0], sizes = [1, 32], strides = [1, 1]} : vector<2x32xf32> to vector<1x32xf32>
    %376 = vector.extract_strided_slice %285 {offsets = [1, 0], sizes = [1, 32], strides = [1, 1]} : vector<2x32xf32> to vector<1x32xf32>
    %377 = vector.extract_strided_slice %323 {offsets = [1, 0], sizes = [1, 32], strides = [1, 1]} : vector<2x32xf32> to vector<1x32xf32>
    %378 = vector.extract_strided_slice %361 {offsets = [1, 0], sizes = [1, 32], strides = [1, 1]} : vector<2x32xf32> to vector<1x32xf32>
    %379 = tpu.concatenate %371, %372, %373, %374, %375, %376, %377, %378 in 0 : vector<1x32xf32>, vector<1x32xf32>, vector<1x32xf32>, vector<1x32xf32>, vector<1x32xf32>, vector<1x32xf32>, vector<1x32xf32>, vector<1x32xf32> -> vector<8x32xf32>
    %380 = tpu.concatenate %370, %379 in 0 : vector<8x32xf32>, vector<8x32xf32> -> vector<16x32xf32>
    %cst_58 = arith.constant 0.000000e+00 : f32
    %381 = vector.broadcast %cst_58 : f32 to vector<16x32xf32>
    %382 = arith.cmpf ogt, %380, %381 : vector<16x32xf32>
    %cst_59 = arith.constant 2.000000e-02 : f32
    %383 = vector.broadcast %cst_59 : f32 to vector<16x32xf32>
    %384 = arith.mulf %383, %380 : vector<16x32xf32>
    %385 = arith.select %382, %380, %384 : vector<16x32xi1>, vector<16x32xf32>
    %386 = arith.truncf %385 : vector<16x32xf32> to vector<16x32xbf16>
    %cst_60 = arith.constant dense<0.000000e+00> : vector<16x32xf32>
    %387 = tpu.matmul %386, %4, %cst_60 {dimension_numbers = #tpu.dot_dimension_numbers<[1], [0], [0], [1], [0, 0, 1, 1], [], []>} : vector<16x32xbf16>, vector<32x32xbf16>, vector<16x32xf32> -> vector<16x32xf32>
    %388 = vector.broadcast %9 : vector<1x32xf32> to vector<16x32xf32>
    %389 = arith.addf %387, %388 : vector<16x32xf32>
    %cst_61 = arith.constant 0.000000e+00 : f32
    %390 = vector.broadcast %cst_61 : f32 to vector<16x32xf32>
    %391 = arith.cmpf ogt, %389, %390 : vector<16x32xf32>
    %cst_62 = arith.constant 2.000000e-02 : f32
    %392 = vector.broadcast %cst_62 : f32 to vector<16x32xf32>
    %393 = arith.mulf %392, %389 : vector<16x32xf32>
    %394 = arith.select %391, %389, %393 : vector<16x32xi1>, vector<16x32xf32>
    %395 = arith.truncf %394 : vector<16x32xf32> to vector<16x32xbf16>
    %cst_63 = arith.constant dense<0.000000e+00> : vector<16x2xf32>
    %396 = tpu.matmul %395, %5, %cst_63 {dimension_numbers = #tpu.dot_dimension_numbers<[1], [0], [0], [1], [0, 0, 1, 1], [], []>} : vector<16x32xbf16>, vector<32x2xbf16>, vector<16x2xf32> -> vector<16x2xf32>
    %397 = vector.broadcast %10 : vector<1x2xf32> to vector<16x2xf32>
    %398 = arith.addf %396, %397 : vector<16x2xf32>
    %399 = vector.extract_strided_slice %398 {offsets = [0, 0], sizes = [16, 1], strides = [1, 1]} : vector<16x2xf32> to vector<16x1xf32>
    %c0_64 = arith.constant 0 : index
    %c0_65 = arith.constant 0 : index
    %400 = vector.load %arg5[%c0_64, %c0_65] : memref<16x1xf32, #tpu.memory_space<vmem>>, vector<16x1xf32>
    tpu.vector_store %arg5[%c0_64, %c0_65], %399 {strides = array<i32>} : memref<16x1xf32, #tpu.memory_space<vmem>>, vector<16x1xf32>,
    %401 = vector.extract_strided_slice %398 {offsets = [0, 1], sizes = [16, 1], strides = [1, 1]} : vector<16x2xf32> to vector<16x1xf32>
    %c0_66 = arith.constant 0 : index
    %c0_67 = arith.constant 0 : index
    %402 = vector.load %arg6[%c0_66, %c0_67] : memref<16x1xf32, #tpu.memory_space<vmem>>, vector<16x1xf32>
    tpu.vector_store %arg6[%c0_66, %c0_67], %401 {strides = array<i32>} : memref<16x1xf32, #tpu.memory_space<vmem>>, vector<16x1xf32>,
    return
  }
}

</mosaic_0001>

<bundles_post_ra>
// kernel: rrlstm_forward.1
= control target key start
LH: loop header
LB: loop body
LE: loop exit
PB: predicated region body
PF: predicated region fallthrough
CT: control target
= control target key end

     0   :  { %12 = vsyncpa [#allocation3], 0  ;;  %s2128_s21 = smov [#allocation2]   ;;  %s2610_s0 = inlined_call_operand.vmem [shape: f32[16,16], index: 0, kind: input, shape index: {}]   ;;  %s2611_s1 = inlined_call_operand.vmem [shape: s32[16,1], index: 1, kind: input, shape index: {}]   ;;  %s2612_s2 = inlined_call_operand.vmem [shape: bf16[128,128], index: 2, kind: input, shape index: {}]   ;;  %s2613_s3 = inlined_call_operand.vmem [shape: bf16[80,32], index: 3, kind: input, shape index: {}]   ;;  %s2614_s4 = inlined_call_operand.hbm [shape: f32[8,128], index: 4, kind: input, shape index: {}]   ;;  %s2615_s5 = inlined_call_operand.vmem [shape: f32[16,1], index: 5, kind: output, shape index: {0}]   ;;  %s2616_s6 = inlined_call_operand.vmem [shape: f32[16,1], index: 6, kind: output, shape index: {1}]  }
   0x1   :  { %s27_s22 = sshll.u32 %s2128_s21, 4  ;;  %s28_s22 = int_to_ptr.vmem [resolvable:$true] %s27_s22 }
   0x2   :  { %s2114_s23 = scalar_lea.vmem %s28_s22, 128  ;;  %p2119_p1 = scmp.lt.s32.totalorder %s28_s22, %s28_s22 }
   0x3   :  { %p2115_p0 = scmp.ne.s32.totalorder %s28_s22, %s2114_s23  ;;  %p2120_p2 = scmp.lt.s32.totalorder %s2114_s23, %s2114_s23 }
   0x5   :  { %p2121_p3 = por %p2120_p2, %p2119_p1 }
   0x7   :  { %p2122_p4 = pnand %p2121_p3, %p2115_p0 }
   0x9   :  { %2125 = shalt.err (!%p2122_p4)
}
   0xa   :  { %30 = dma.hbm_to_vmem [thread:$0]  %s2614_s4, 128, %s28_s22, [#allocation3]  }
   0xb   :  { %2126 = dma.done.wait [#allocation3], 128  }
   0xc   :  { %2127 = vsyncadd [#allocation3], 4294967168  ;;  %v2129_v0 = vmov 0   ;;  %v2130_v1 = vmov 0.0   ;;  %v63_v2 = vld [vmem:[%s2611_s1] sm:$0xff]  ;;  %vm86_vm0 = vcmask 1042432   ;;  %v65_v6 = vlaneseq }
   0xd   :  { %1965 = vset.pattern.permute.xlu0 %v2129_v0  ;;  %1769 = vmatprep.subr.bf16.mxu0 %v2130_v1  ;;  %v49_v3 = vld [vmem:[%s2613_s3] sm:$0x7]  ;;  %v64_v4 = vld [vmem:[%s2611_s1 + $0x8] sm:$0xff]  ;;  %vm2131_vm1 = vmmov 0   ;;  %vm82_vm4 = vcmask 48128   ;;  %v2198_v13 = vld [vmem:[%s2612_s2 + $0x10] sm:$0xff]  }
   0xe   :  { %1775 = vmatprep.subr.bf16.mxu1 %v2130_v1  ;;  %68 = vperm.xlu0 %1965, %v63_v2   ;;  %v88_v5 = vsel %vm86_vm0, %v49_v3, 0  ;;  %v66_v7 = vand.u32 127, %v65_v6  ;;  %v1967_v14 = vld [vmem:[%s2612_s2] sm:$0xff]   ;;  %v2208_v15 = vld [vmem:[%s2612_s2 + $0x8] sm:$0xff]   ;;  %s2132_s12 = smov 112   ;;  %vm156_vm5 = vcmask 130048  }
   0xf   :  { %1770 = vmatpush3.bf16.msra.mxu0 %v88_v5  ;;  %1771 = vmatprep.mubr.msk.bf16.mxu0 %vm2131_vm1, %v2130_v1  ;;  %v1644_v16 = vld [vmem:[#allocation2] ss:$0 sm:$0xff]  ;;  %v132_v25 = vld [vmem:[%s2610_s0 + $0x8] sm:$0xff]  ;;  %v1646_v36 = vld [vmem:[#allocation2 + $0x1] ss:$0 sm:$0xff]  ;;  %vm204_vm6 = vcmask 1040384  }
  0x10   :  { %1781 = vmatprep.subr.bf16.mxu0 %v2130_v1  ;;  %1777 = vmatprep.mubr.msk.bf16.mxu1 %vm2131_vm1, %v2130_v1  ;;  %v131_v23 = vld [vmem:[%s2610_s0] sm:$0xff]  ;;  %s2133_s0 = smov 64   ;;  %s2134_s17 = smov 32   ;;  %vm252_vm7 = vcmask 261120   ;;  %vm355_vm8 = vcmask 523264   ;;  %vm1452_vm9 = vcmask 1041408  }
  0x11   :  { %1776 = vmatpush3.bf16.msra.mxu1 %v1967_v14  ;;  %v2257_v14 = vld [vmem:[%s2612_s2 + $0x30] sm:$0xff]   ;;  %vm1455_vm10 = vcmask 1043456   ;;  %vm1457_vm11 = vcmask 1044480   ;;  %vm1459_vm12 = vcmask 1045504   ;;  %vm1461_vm13 = vcmask 1046528   ;;  %s2135_s8 = smov 127  }
  0x12   :  { %71 = vperm.xlu0 %1965, %v64_v4   ;;  %1789 = vmatprep.subr.bf16.mxu1 %v2130_v1 }
  0x89   :  { %v69_v8 = vpop.permute.xlu0 %68 }
  0x8a   :  { %vm73_vm2 = vcmp.eq.s32.totalorder %v69_v8, %v66_v7 }
  0x8b   :  { %v75_v10 = vsel %vm73_vm2, 1.0, %v2130_v1  ;;  %vm1622_vm2 = vcmask 7168  }
  0x8d   :  { %v72_v9 = vpop.permute.xlu0 %71 }
  0x8e   :  { %vm74_vm3 = vcmp.eq.s32.totalorder %v72_v9, %v66_v7 }
  0x8f   :  { %v76_v11 = vsel %vm74_vm3, 1.0, %v2130_v1 }
  0x90   :  { %v77_v12 = vpack.c.bf16 %v76_v11, %v75_v10 }
  0x92   :  { %1772 = vmatmul.mubr.msk.bf16.vlgmr.msra.gmra.mxu0 %vm82_vm4, %v77_v12 }
  0x93   :  { %1785 = vmatprep.mubr.msk.bf16.mxu0 %vm2131_vm1, %v2130_v1  ;;  %1782 = vmatpush3.bf16.msra.mxu0 %v2198_v13 }
  0x94   :  { %1783 = vmatprep.subr.bf16.mxu0 %v2130_v1 }
  0x97   :  { %1784 = vmatpush3.bf16.msra.mxu0 %v2208_v15 }
  0x98   :  { %1801 = vmatprep.subr.bf16.mxu0 %v2130_v1 }
  0x9a   :  { %1786 = vmatmul.mubr.bf16.vlgmr.msra.gmra.mxu0 %v2129_v0 }
  0x9b   :  { %1802 = vmatpush3.bf16.msra.mxu0 %v2198_v13  ;;  %1805 = vmatprep.mubr.msk.bf16.mxu0 %vm2131_vm1, %v2130_v1 }
  0x9c   :  { %1803 = vmatprep.subr.bf16.mxu0 %v2130_v1 }
  0x9f   :  { %1804 = vmatpush3.bf16.msra.mxu0 %v2208_v15 }
  0xa0   :  { %1809 = vmatprep.subr.bf16.mxu0 %v2130_v1 }
 0x152   :  { %v124_v17 = vpop.f32.mrf.mxu0 }
 0x153   :  { %v125_v18 = vadd.f32 %v1644_v16, %v124_v17  ;;  %v2270_v17 = vld [vmem:[%s2612_s2 + $0x20] sm:$0xff]  }
 0x154   :  { %v1773_v19 = vpop.f32.mrf.mxu0 }
 0x155   :  { %137 = vrot.lane.b32.xlu1 %v125_v18, %s2132_s12  ;;  %v133_v26 = vmul.f32 %v131_v23, %v125_v18  ;;  %v2278_v19 = vld [vmem:[%s2612_s2 + $0x18] sm:$0xff]  }
 0x156   :  { %v127_v20 = vpop.f32.mrf.mxu0 }
 0x157   :  { %v128_v21 = vadd.f32 %v1644_v16, %v127_v20  ;;  %v2263_v16 = vld [vmem:[%s2612_s2 + $0x28] sm:$0xff]  }
 0x158   :  { %v1774_v22 = vpop.f32.mrf.mxu0 }
 0x159   :  { %139 = vrot.lane.b32.xlu1 %v128_v21, %s2132_s12  ;;  %v134_v27 = vmul.f32 %v132_v25, %v128_v21  ;;  %v2303_v25 = vld [vmem:[#allocation2 + $0x2] ss:$0 sm:$0xff] }
 0x15a   :  { %v290_v32 = vpop.f32.mrf.mxu0 }
 0x15c   :  { %v1787_v33 = vpop.f32.mrf.mxu0 }
 0x15e   :  { %v293_v34 = vpop.f32.mrf.mxu0 }
 0x160   :  { %v1788_v35 = vpop.f32.mrf.mxu0 }
 0x1c7   :  { %v138_v24 = vpop.permute.xlu1 %137 }
 0x1c8   :  { %v143_v29 = vadd.f32 %v138_v24, %v133_v26 }
 0x1cb   :  { %v140_v28 = vpop.permute.xlu1 %139 }
 0x1cc   :  { %v144_v30 = vadd.f32 %v140_v28, %v134_v27 }
 0x1ce   :  { %v145_v31 = vpack.c.bf16 %v144_v30, %v143_v29 }
 0x1d0   :  { %1778 = vmatmul.mubr.msk.bf16.vlgmr.msra.gmra.mxu1 %vm156_vm5, %v145_v31 }
 0x1d1   :  { %1797 = vmatprep.mubr.msk.bf16.mxu1 %vm2131_vm1, %v2130_v1  ;;  %1790 = vmatpush3.bf16.msra.mxu1 %v2257_v14 }
 0x1d2   :  { %1791 = vmatprep.subr.bf16.mxu1 %v2130_v1 }
 0x1d5   :  { %1792 = vmatpush3.bf16.msra.mxu1 %v2263_v16 }
 0x1d6   :  { %1793 = vmatprep.subr.bf16.mxu1 %v2130_v1 }
 0x1d9   :  { %1794 = vmatpush3.bf16.msra.mxu1 %v2270_v17 }
 0x1da   :  { %1795 = vmatprep.subr.bf16.mxu1 %v2130_v1 }
 0x1dd   :  { %1796 = vmatpush3.bf16.msra.mxu1 %v2278_v19 }
 0x1de   :  { %1821 = vmatprep.subr.bf16.mxu1 %v2130_v1 }
 0x290   :  { %v194_v37 = vpop.f32.mrf.mxu1 }
 0x291   :  { %v195_v38 = vadd.f32 %v1646_v36, %v194_v37 }
 0x292   :  { %v1779_v39 = vpop.f32.mrf.mxu1 }
 0x293   :  { %v207_v42 = vrot.slane %v195_v38, 1  ;;  %v210_v43 = vrot.slane %v195_v38, 2  ;;  %v215_v45 = vrot.slane %v195_v38, 3  ;;  %v220_v46 = vrot.slane %v195_v38, 4 }
 0x294   :  { %v197_v40 = vpop.f32.mrf.mxu1  ;;  %v225_v47 = vrot.slane %v195_v38, 5  ;;  %v230_v48 = vrot.slane %v195_v38, 6  ;;  %v235_v60 = vrot.slane %v195_v38, 7 }
 0x295   :  { %v198_v41 = vadd.f32 %v1646_v36, %v197_v40 }
 0x296   :  { %v1780_v44 = vpop.f32.mrf.mxu1 }
 0x297   :  { %v202_v49 = vrot.slane %v198_v41, 7  ;;  %v2228_v50 = vsel %vm204_vm6, %v207_v42, %v198_v41  ;;  %v212_v51 = vrot.slane %v198_v41, 1  ;;  %v217_v52 = vrot.slane %v198_v41, 2 }
 0x298   :  { %v222_v53 = vrot.slane %v198_v41, 3  ;;  %v227_v54 = vrot.slane %v198_v41, 4  ;;  %v232_v55 = vrot.slane %v198_v41, 5  ;;  %v237_v56 = vrot.slane %v198_v41, 6 }
 0x299   :  { %v205_v57 = vsel %vm204_vm6, %v195_v38, %v202_v49  ;;  %v2232_v58 = vsel %vm204_vm6, %v210_v43, %v212_v51  ;;  %v2235_v59 = vsel %vm204_vm6, %v215_v45, %v217_v52 }
 0x29a   :  { %v296_v61 = vadd.f32 %v290_v32, %v205_v57  ;;  %v2238_v62 = vsel %vm204_vm6, %v220_v46, %v222_v53  ;;  %v2241_v63 = vsel %vm204_vm6, %v225_v47, %v227_v54  ;;  %v2244_v0 = vsel %vm204_vm6, %v230_v48, %v232_v55 }
 0x29b   :  { %v2247_v2 = vsel %vm204_vm6, %v235_v60, %v237_v56 }
 0x29c   :  { %1977 = vtanh.f32 %v296_v61  ;;  %v1651_v4 = vmul.f32 -1.442695, %v296_v61 }
 0x29e   :  { %1979 = vpow2.f32 %v1651_v4 }
 0x2a9   :  { %v1978_v3 = vpop.eup %1977 }
 0x2aa   :  { %306 = vrot.lane.b32.xlu0 %v1978_v3, %s2133_s0 }
 0x2ab   :  { %v1980_v5 = vpop.eup %1979 }
 0x2ac   :  { %v300_v6 = vadd.f32 1.0, %v1980_v5 }
 0x2ae   :  { %1981 = vrcp.f32 %v300_v6 }
 0x2bb   :  { %v1982_v7 = vpop.eup %1981 }
 0x2bc   :  { %v304_v10 = vmul.f32 0.0, %v1982_v7 }
 0x31c   :  { %v307_v8 = vpop.permute.xlu0 %306 }
 0x31d   :  { %v309_v9 = vmul.f32 %v1982_v7, %v307_v8 }
 0x31f   :  { %311 = vrot.lane.b32.xlu1 %v309_v9, %s2134_s17 }
 0x391   :  { %v312_v11 = vpop.permute.xlu1 %311 }
 0x392   :  { %v2251_v12 = vadd.f32 %v312_v11, %v304_v10 }
 0x394   :  { %1983 = vtanh.f32 %v2251_v12 }
 0x3a1   :  { %v1984_v18 = vpop.eup %1983 }
 0x3a2   :  { %317 = vrot.lane.b32.xlu0 %v1984_v18, %s2133_s0 }
 0x414   :  { %v318_v20 = vpop.permute.xlu0 %317 }
 0x415   :  { %v320_v21 = vmul.f32 %v1982_v7, %v318_v20 }
 0x417   :  { %v321_v22 = vpack.c.bf16 %v320_v21, %v320_v21 }
 0x419   :  { %323 = vrot.lane.b32.xlu1 %v321_v22, %s2134_s17 }
 0x48b   :  { %v324_v23 = vpop.permute.xlu1 %323 }
 0x48c   :  { %v326_v24 = vsel %vm252_vm7, %v324_v23, 0  ;;  %1806 = vmatmul.mubr.msk.bf16.vlgmr.msra.gmra.mxu0 %vm252_vm7, %v324_v23 }
 0x48d   :  { %1798 = vmatmul.mubr.msk.bf16.vlgmr.msra.gmra.mxu1 %vm355_vm8, %v326_v24  ;;  %1810 = vmatpush3.bf16.msra.mxu0 %v2257_v14 }
 0x48e   :  { %1811 = vmatprep.subr.bf16.mxu0 %v2130_v1  ;;  %1822 = vmatpush3.bf16.msra.mxu1 %v2198_v13 }
 0x48f   :  { %1823 = vmatprep.subr.bf16.mxu1 %v2130_v1  ;;  %1825 = vmatprep.mubr.msk.bf16.mxu1 %vm2131_vm1, %v2130_v1 }
 0x490   :  { %1817 = vmatprep.mubr.msk.bf16.mxu0 %vm2131_vm1, %v2130_v1 }
 0x491   :  { %1812 = vmatpush3.bf16.msra.mxu0 %v2263_v16 }
 0x492   :  { %1813 = vmatprep.subr.bf16.mxu0 %v2130_v1  ;;  %1824 = vmatpush3.bf16.msra.mxu1 %v2208_v15 }
 0x493   :  { %1829 = vmatprep.subr.bf16.mxu1 %v2130_v1 }
 0x495   :  { %1814 = vmatpush3.bf16.msra.mxu0 %v2270_v17 }
 0x496   :  { %1815 = vmatprep.subr.bf16.mxu0 %v2130_v1 }
 0x499   :  { %1816 = vmatpush3.bf16.msra.mxu0 %v2278_v19 }
 0x49a   :  { %1841 = vmatprep.subr.bf16.mxu0 %v2130_v1 }
 0x54c   :  { %v459_v26 = vpop.f32.mrf.mxu0 }
 0x54d   :  { %v465_v27 = vadd.f32 %v459_v26, %v2228_v50  ;;  %v392_v28 = vpop.f32.mrf.mxu1 }
 0x54e   :  { %v393_v29 = vadd.f32 %v2303_v25, %v392_v28  ;;  %v1807_v30 = vpop.f32.mrf.mxu0 }
 0x54f   :  { %1985 = vtanh.f32 %v465_v27  ;;  %v1799_v31 = vpop.f32.mrf.mxu1  ;;  %v1660_v38 = vmul.f32 -1.442695, %v465_v27 }
 0x550   :  { %1987 = vtanh.f32 %v393_v29  ;;  %v462_v32 = vpop.f32.mrf.mxu0  ;;  %v1658_v39 = vmul.f32 -1.442695, %v393_v29 }
 0x551   :  { %v395_v33 = vpop.f32.mrf.mxu1  ;;  %1989 = vpow2.f32 %v1660_v38 }
 0x552   :  { %v1808_v34 = vpop.f32.mrf.mxu0  ;;  %1991 = vpow2.f32 %v1658_v39 }
 0x553   :  { %v1800_v35 = vpop.f32.mrf.mxu1 }
 0x55c   :  { %v1986_v36 = vpop.eup %1985 }
 0x55d   :  { %v1988_v37 = vpop.eup %1987  ;;  %475 = vrot.lane.b32.xlu1 %v1986_v36, %s2133_s0 }
 0x55e   :  { %407 = vrot.lane.b32.xlu0 %v1988_v37, %s2133_s0  ;;  %v1990_v40 = vpop.eup %1989 }
 0x55f   :  { %v1992_v41 = vpop.eup %1991  ;;  %v469_v42 = vadd.f32 1.0, %v1990_v40 }
 0x560   :  { %v401_v43 = vadd.f32 1.0, %v1992_v41 }
 0x561   :  { %1993 = vrcp.f32 %v469_v42 }
 0x562   :  { %1995 = vrcp.f32 %v401_v43 }
 0x56e   :  { %v1994_v44 = vpop.eup %1993 }
 0x56f   :  { %v1996_v46 = vpop.eup %1995  ;;  %v473_v50 = vmul.f32 %v1994_v44, %v2251_v12 }
 0x570   :  { %v405_v52 = vmul.f32 0.0, %v1996_v46 }
 0x5cf   :  { %v476_v45 = vpop.permute.xlu1 %475 }
 0x5d0   :  { %v478_v47 = vmul.f32 %v1994_v44, %v476_v45  ;;  %v408_v48 = vpop.permute.xlu0 %407 }
 0x5d1   :  { %v410_v49 = vmul.f32 %v1996_v46, %v408_v48 }
 0x5d2   :  { %480 = vrot.lane.b32.xlu1 %v478_v47, %s2134_s17 }
 0x5d3   :  { %412 = vrot.lane.b32.xlu0 %v410_v49, %s2134_s17 }
 0x644   :  { %v481_v51 = vpop.permute.xlu1 %480 }
 0x645   :  { %v2312_v53 = vadd.f32 %v481_v51, %v473_v50  ;;  %v413_v54 = vpop.permute.xlu0 %412 }
 0x646   :  { %v2314_v55 = vadd.f32 %v413_v54, %v405_v52 }
 0x647   :  { %1997 = vtanh.f32 %v2312_v53 }
 0x648   :  { %1999 = vtanh.f32 %v2314_v55 }
 0x654   :  { %v1998_v56 = vpop.eup %1997 }
 0x655   :  { %v2000_v57 = vpop.eup %1999  ;;  %486 = vrot.lane.b32.xlu1 %v1998_v56, %s2133_s0 }
 0x656   :  { %418 = vrot.lane.b32.xlu0 %v2000_v57, %s2133_s0 }
 0x6c7   :  { %v487_v60 = vpop.permute.xlu1 %486 }
 0x6c8   :  { %v489_v61 = vmul.f32 %v1994_v44, %v487_v60  ;;  %v419_v3 = vpop.permute.xlu0 %418 }
 0x6c9   :  { %v2320_v4 = vmul.f32 %v1996_v46, %v419_v3 }
 0x6ca   :  { %v490_v5 = vpack.c.bf16 %v489_v61, %v489_v61 }
 0x6cb   :  { %v422_v6 = vpack.c.bf16 %v2320_v4, %v2320_v4 }
 0x6cc   :  { %492 = vrot.lane.b32.xlu0 %v490_v5, %s2134_s17 }
 0x6cd   :  { %495 = vrot.lane.b32.xlu1 %v422_v6, %s2133_s0 }
 0x73e   :  { %v493_v7 = vpop.permute.xlu0 %492 }
 0x73f   :  { %v496_v8 = vpop.permute.xlu1 %495  ;;  %1826 = vmatmul.mubr.msk.bf16.vlgmr.msra.gmra.mxu1 %vm252_vm7, %v493_v7 }
 0x740   :  { %v499_v9 = vsel %vm252_vm7, %v493_v7, %v496_v8  ;;  %1830 = vmatpush3.bf16.msra.mxu1 %v2257_v14  ;;  %1837 = vmatprep.mubr.msk.bf16.mxu1 %vm2131_vm1, %v2130_v1 }
 0x741   :  { %1818 = vmatmul.mubr.msk.bf16.vlgmr.msra.gmra.mxu0 %vm355_vm8, %v499_v9  ;;  %1831 = vmatprep.subr.bf16.mxu1 %v2130_v1 }
 0x742   :  { %1842 = vmatpush3.bf16.msra.mxu0 %v2198_v13  ;;  %1845 = vmatprep.mubr.msk.bf16.mxu0 %vm2131_vm1, %v2130_v1 }
 0x743   :  { %1843 = vmatprep.subr.bf16.mxu0 %v2130_v1 }
 0x744   :  { %1832 = vmatpush3.bf16.msra.mxu1 %v2263_v16 }
 0x745   :  { %1833 = vmatprep.subr.bf16.mxu1 %v2130_v1 }
 0x746   :  { %1844 = vmatpush3.bf16.msra.mxu0 %v2208_v15 }
 0x747   :  { %1849 = vmatprep.subr.bf16.mxu0 %v2130_v1 }
 0x748   :  { %1834 = vmatpush3.bf16.msra.mxu1 %v2270_v17 }
 0x749   :  { %1835 = vmatprep.subr.bf16.mxu1 %v2130_v1 }
 0x74c   :  { %1836 = vmatpush3.bf16.msra.mxu1 %v2278_v19 }
 0x74d   :  { %1861 = vmatprep.subr.bf16.mxu1 %v2130_v1 }
 0x7ff   :  { %v603_v10 = vpop.f32.mrf.mxu1 }
 0x800   :  { %v609_v11 = vadd.f32 %v603_v10, %v2232_v58 }
 0x801   :  { %v536_v12 = vpop.f32.mrf.mxu0  ;;  %v1827_v18 = vpop.f32.mrf.mxu1 }
 0x802   :  { %2001 = vtanh.f32 %v609_v11  ;;  %v537_v20 = vadd.f32 %v2303_v25, %v536_v12  ;;  %v1664_v29 = vmul.f32 -1.442695, %v609_v11 }
 0x803   :  { %v1819_v21 = vpop.f32.mrf.mxu0  ;;  %v606_v22 = vpop.f32.mrf.mxu1 }
 0x804   :  { %2003 = vtanh.f32 %v537_v20  ;;  %v1662_v30 = vmul.f32 -1.442695, %v537_v20 }
 0x805   :  { %v539_v23 = vpop.f32.mrf.mxu0  ;;  %v1828_v24 = vpop.f32.mrf.mxu1  ;;  %2005 = vpow2.f32 %v1664_v29 }
 0x806   :  { %2007 = vpow2.f32 %v1662_v30 }
 0x807   :  { %v1820_v26 = vpop.f32.mrf.mxu0 }
 0x80f   :  { %v2002_v27 = vpop.eup %2001 }
 0x810   :  { %619 = vrot.lane.b32.xlu1 %v2002_v27, %s2133_s0 }
 0x811   :  { %v2004_v28 = vpop.eup %2003 }
 0x812   :  { %551 = vrot.lane.b32.xlu0 %v2004_v28, %s2133_s0  ;;  %v2006_v58 = vpop.eup %2005 }
 0x813   :  { %v2008_v31 = vpop.eup %2007  ;;  %v613_v32 = vadd.f32 1.0, %v2006_v58 }
 0x814   :  { %v545_v33 = vadd.f32 1.0, %v2008_v31 }
 0x815   :  { %2009 = vrcp.f32 %v613_v32 }
 0x816   :  { %2011 = vrcp.f32 %v545_v33 }
 0x822   :  { %v2010_v34 = vpop.eup %2009 }
 0x823   :  { %v2012_v37 = vpop.eup %2011  ;;  %v617_v40 = vmul.f32 %v2010_v34, %v2312_v53 }
 0x824   :  { %v549_v43 = vmul.f32 %v2012_v37, %v2314_v55 }
 0x882   :  { %v620_v35 = vpop.permute.xlu1 %619 }
 0x883   :  { %v622_v36 = vmul.f32 %v2010_v34, %v620_v35 }
 0x884   :  { %v552_v38 = vpop.permute.xlu0 %551 }
 0x885   :  { %624 = vrot.lane.b32.xlu1 %v622_v36, %s2134_s17  ;;  %v554_v39 = vmul.f32 %v2012_v37, %v552_v38 }
 0x887   :  { %556 = vrot.lane.b32.xlu0 %v554_v39, %s2134_s17 }
 0x8f7   :  { %v625_v41 = vpop.permute.xlu1 %624 }
 0x8f8   :  { %v2352_v42 = vadd.f32 %v625_v41, %v617_v40 }
 0x8f9   :  { %v557_v44 = vpop.permute.xlu0 %556 }
 0x8fa   :  { %2013 = vtanh.f32 %v2352_v42  ;;  %v2356_v45 = vadd.f32 %v557_v44, %v549_v43  ;;  %v1464_v44 = vrot.slane %v2320_v4, 1 }
 0x8fc   :  { %2015 = vtanh.f32 %v2356_v45 }
 0x907   :  { %v2014_v46 = vpop.eup %2013 }
 0x908   :  { %630 = vrot.lane.b32.xlu1 %v2014_v46, %s2133_s0 }
 0x909   :  { %v2016_v47 = vpop.eup %2015 }
 0x90a   :  { %562 = vrot.lane.b32.xlu0 %v2016_v47, %s2133_s0 }
 0x97a   :  { %v631_v48 = vpop.permute.xlu1 %630 }
 0x97b   :  { %v633_v49 = vmul.f32 %v2010_v34, %v631_v48 }
 0x97c   :  { %v563_v51 = vpop.permute.xlu0 %562 }
 0x97d   :  { %v634_v50 = vpack.c.bf16 %v633_v49, %v633_v49  ;;  %v2361_v52 = vmul.f32 %v2012_v37, %v563_v51 }
 0x97f   :  { %636 = vrot.lane.b32.xlu0 %v634_v50, %s2134_s17  ;;  %v566_v53 = vpack.c.bf16 %v2361_v52, %v2361_v52  ;;  %v1431_v41 = vrot.slane %v2361_v52, 7  ;;  %v1478_v49 = vsel %vm204_vm6, %v1464_v44, %v2361_v52 }
 0x981   :  { %639 = vrot.lane.b32.xlu1 %v566_v53, %s2133_s0  ;;  %v1451_v48 = vsel %vm204_vm6, %v2320_v4, %v1431_v41 }
 0x9f1   :  { %v637_v54 = vpop.permute.xlu0 %636 }
 0x9f2   :  { %1846 = vmatmul.mubr.msk.bf16.vlgmr.msra.gmra.mxu0 %vm252_vm7, %v637_v54 }
 0x9f3   :  { %1850 = vmatpush3.bf16.msra.mxu0 %v2257_v14  ;;  %1857 = vmatprep.mubr.msk.bf16.mxu0 %vm2131_vm1, %v2130_v1  ;;  %v640_v55 = vpop.permute.xlu1 %639 }
 0x9f4   :  { %1851 = vmatprep.subr.bf16.mxu0 %v2130_v1  ;;  %v643_v56 = vsel %vm252_vm7, %v637_v54, %v640_v55 }
 0x9f5   :  { %1838 = vmatmul.mubr.msk.bf16.vlgmr.msra.gmra.mxu1 %vm355_vm8, %v643_v56 }
 0x9f6   :  { %1862 = vmatpush3.bf16.msra.mxu1 %v2198_v13  ;;  %1865 = vmatprep.mubr.msk.bf16.mxu1 %vm2131_vm1, %v2130_v1 }
 0x9f7   :  { %1852 = vmatpush3.bf16.msra.mxu0 %v2263_v16  ;;  %1863 = vmatprep.subr.bf16.mxu1 %v2130_v1 }
 0x9f8   :  { %1853 = vmatprep.subr.bf16.mxu0 %v2130_v1 }
 0x9fa   :  { %1864 = vmatpush3.bf16.msra.mxu1 %v2208_v15 }
 0x9fb   :  { %1854 = vmatpush3.bf16.msra.mxu0 %v2270_v17  ;;  %1869 = vmatprep.subr.bf16.mxu1 %v2130_v1 }
 0x9fc   :  { %1855 = vmatprep.subr.bf16.mxu0 %v2130_v1 }
 0x9ff   :  { %1856 = vmatpush3.bf16.msra.mxu0 %v2278_v19 }
 0xa00   :  { %1881 = vmatprep.subr.bf16.mxu0 %v2130_v1 }
 0xab2   :  { %v747_v57 = vpop.f32.mrf.mxu0 }
 0xab3   :  { %v753_v60 = vadd.f32 %v747_v57, %v2235_v59 }
 0xab4   :  { %v1847_v61 = vpop.f32.mrf.mxu0 }
 0xab5   :  { %2017 = vtanh.f32 %v753_v60  ;;  %v680_v3 = vpop.f32.mrf.mxu1  ;;  %v1668_v18 = vmul.f32 -1.442695, %v753_v60 }
 0xab6   :  { %v750_v5 = vpop.f32.mrf.mxu0  ;;  %v681_v6 = vadd.f32 %v2303_v25, %v680_v3 }
 0xab7   :  { %v1839_v7 = vpop.f32.mrf.mxu1 }
 0xab8   :  { %v1848_v8 = vpop.f32.mrf.mxu0  ;;  %2019 = vtanh.f32 %v681_v6  ;;  %v1666_v59 = vmul.f32 -1.442695, %v681_v6 }
 0xab9   :  { %v683_v9 = vpop.f32.mrf.mxu1  ;;  %2021 = vpow2.f32 %v1668_v18 }
 0xaba   :  { %2023 = vpow2.f32 %v1666_v59 }
 0xabb   :  { %v1840_v10 = vpop.f32.mrf.mxu1 }
 0xac2   :  { %v2018_v11 = vpop.eup %2017 }
 0xac3   :  { %763 = vrot.lane.b32.xlu1 %v2018_v11, %s2133_s0 }
 0xac5   :  { %v2020_v12 = vpop.eup %2019 }
 0xac6   :  { %695 = vrot.lane.b32.xlu0 %v2020_v12, %s2133_s0  ;;  %v2022_v20 = vpop.eup %2021 }
 0xac7   :  { %v757_v21 = vadd.f32 1.0, %v2022_v20  ;;  %v2024_v22 = vpop.eup %2023 }
 0xac8   :  { %v689_v23 = vadd.f32 1.0, %v2024_v22 }
 0xac9   :  { %2025 = vrcp.f32 %v757_v21 }
 0xaca   :  { %2027 = vrcp.f32 %v689_v23 }
 0xad6   :  { %v2026_v24 = vpop.eup %2025 }
 0xad7   :  { %v2028_v28 = vpop.eup %2027  ;;  %v761_v58 = vmul.f32 %v2026_v24, %v2352_v42 }
 0xad8   :  { %v693_v33 = vmul.f32 %v2028_v28, %v2356_v45 }
 0xb35   :  { %v764_v26 = vpop.permute.xlu1 %763 }
 0xb36   :  { %v766_v27 = vmul.f32 %v2026_v24, %v764_v26 }
 0xb38   :  { %768 = vrot.lane.b32.xlu1 %v766_v27, %s2134_s17  ;;  %v696_v29 = vpop.permute.xlu0 %695 }
 0xb39   :  { %v698_v30 = vmul.f32 %v2028_v28, %v696_v29 }
 0xb3b   :  { %700 = vrot.lane.b32.xlu0 %v698_v30, %s2134_s17 }
 0xbaa   :  { %v769_v31 = vpop.permute.xlu1 %768 }
 0xbab   :  { %v2393_v32 = vadd.f32 %v769_v31, %v761_v58 }
 0xbad   :  { %2029 = vtanh.f32 %v2393_v32  ;;  %v701_v34 = vpop.permute.xlu0 %700 }
 0xbae   :  { %v2397_v35 = vadd.f32 %v701_v34, %v693_v33 }
 0xbb0   :  { %2031 = vtanh.f32 %v2397_v35 }
 0xbba   :  { %v2030_v36 = vpop.eup %2029 }
 0xbbb   :  { %774 = vrot.lane.b32.xlu1 %v2030_v36, %s2133_s0 }
 0xbbd   :  { %v2032_v37 = vpop.eup %2031 }
 0xbbe   :  { %706 = vrot.lane.b32.xlu0 %v2032_v37, %s2133_s0 }
 0xc2d   :  { %v775_v38 = vpop.permute.xlu1 %774 }
 0xc2e   :  { %v777_v39 = vmul.f32 %v2026_v24, %v775_v38 }
 0xc30   :  { %v778_v40 = vpack.c.bf16 %v777_v39, %v777_v39  ;;  %v707_v42 = vpop.permute.xlu0 %706 }
 0xc31   :  { %v709_v43 = vmul.f32 %v2028_v28, %v707_v42 }
 0xc32   :  { %780 = vrot.lane.b32.xlu0 %v778_v40, %s2134_s17 }
 0xc33   :  { %v1434_v45 = vrot.slane %v709_v43, 6  ;;  %v1466_v46 = vrot.slane %v709_v43, 7  ;;  %v710_v47 = vpack.c.bf16 %v709_v43, %v709_v43 }
 0xc35   :  { %v2409_v50 = vsel %vm1452_vm9, %v1451_v48, %v1434_v45  ;;  %v2411_v51 = vsel %vm1452_vm9, %v1478_v49, %v1466_v46  ;;  %783 = vrot.lane.b32.xlu1 %v710_v47, %s2133_s0 }
 0xca4   :  { %v781_v53 = vpop.permute.xlu0 %780 }
 0xca5   :  { %1866 = vmatmul.mubr.msk.bf16.vlgmr.msra.gmra.mxu1 %vm252_vm7, %v781_v53 }
 0xca6   :  { %1870 = vmatpush3.bf16.msra.mxu1 %v2257_v14  ;;  %1877 = vmatprep.mubr.msk.bf16.mxu1 %vm2131_vm1, %v2130_v1 }
 0xca7   :  { %1871 = vmatprep.subr.bf16.mxu1 %v2130_v1  ;;  %v784_v4 = vpop.permute.xlu1 %783 }
 0xca8   :  { %v787_v54 = vsel %vm252_vm7, %v781_v53, %v784_v4 }
 0xca9   :  { %1858 = vmatmul.mubr.msk.bf16.vlgmr.msra.gmra.mxu0 %vm355_vm8, %v787_v54 }
 0xcaa   :  { %1872 = vmatpush3.bf16.msra.mxu1 %v2263_v16  ;;  %1882 = vmatpush3.bf16.msra.mxu0 %v2198_v13 }
 0xcab   :  { %1873 = vmatprep.subr.bf16.mxu1 %v2130_v1  ;;  %1883 = vmatprep.subr.bf16.mxu0 %v2130_v1 }
 0xcac   :  { %1885 = vmatprep.mubr.msk.bf16.mxu0 %vm2131_vm1, %v2130_v1 }
 0xcae   :  { %1874 = vmatpush3.bf16.msra.mxu1 %v2270_v17  ;;  %1884 = vmatpush3.bf16.msra.mxu0 %v2208_v15 }
 0xcaf   :  { %1875 = vmatprep.subr.bf16.mxu1 %v2130_v1  ;;  %1889 = vmatprep.subr.bf16.mxu0 %v2130_v1 }
 0xcb2   :  { %1876 = vmatpush3.bf16.msra.mxu1 %v2278_v19 }
 0xcb3   :  { %1901 = vmatprep.subr.bf16.mxu1 %v2130_v1 }
 0xd65   :  { %v891_v52 = vpop.f32.mrf.mxu1 }
 0xd66   :  { %v897_v55 = vadd.f32 %v891_v52, %v2238_v62 }
 0xd67   :  { %v1867_v56 = vpop.f32.mrf.mxu1 }
 0xd68   :  { %2033 = vtanh.f32 %v897_v55  ;;  %v1672_v10 = vmul.f32 -1.442695, %v897_v55 }
 0xd69   :  { %v894_v57 = vpop.f32.mrf.mxu1  ;;  %v824_v60 = vpop.f32.mrf.mxu0 }
 0xd6a   :  { %v825_v61 = vadd.f32 %v2303_v25, %v824_v60 }
 0xd6b   :  { %v1868_v3 = vpop.f32.mrf.mxu1  ;;  %v1859_v5 = vpop.f32.mrf.mxu0 }
 0xd6c   :  { %2035 = vtanh.f32 %v825_v61  ;;  %v1670_v62 = vmul.f32 -1.442695, %v825_v61 }
 0xd6d   :  { %v827_v6 = vpop.f32.mrf.mxu0  ;;  %2037 = vpow2.f32 %v1672_v10 }
 0xd6e   :  { %2039 = vpow2.f32 %v1670_v62 }
 0xd6f   :  { %v1860_v7 = vpop.f32.mrf.mxu0 }
 0xd75   :  { %v2034_v8 = vpop.eup %2033 }
 0xd76   :  { %907 = vrot.lane.b32.xlu1 %v2034_v8, %s2133_s0 }
 0xd79   :  { %v2036_v9 = vpop.eup %2035 }
 0xd7a   :  { %839 = vrot.lane.b32.xlu0 %v2036_v9, %s2133_s0  ;;  %v2038_v11 = vpop.eup %2037 }
 0xd7b   :  { %v901_v12 = vadd.f32 1.0, %v2038_v11  ;;  %v2040_v18 = vpop.eup %2039 }
 0xd7c   :  { %v833_v59 = vadd.f32 1.0, %v2040_v18 }
 0xd7d   :  { %2041 = vrcp.f32 %v901_v12 }
 0xd7e   :  { %2043 = vrcp.f32 %v833_v59 }
 0xd8a   :  { %v2042_v20 = vpop.eup %2041 }
 0xd8b   :  { %v2044_v23 = vpop.eup %2043  ;;  %v905_v27 = vmul.f32 %v2042_v20, %v2393_v32 }
 0xd8c   :  { %v837_v30 = vmul.f32 %v2044_v23, %v2397_v35 }
 0xde8   :  { %v908_v21 = vpop.permute.xlu1 %907 }
 0xde9   :  { %v910_v22 = vmul.f32 %v2042_v20, %v908_v21 }
 0xdeb   :  { %912 = vrot.lane.b32.xlu1 %v910_v22, %s2134_s17 }
 0xdec   :  { %v840_v24 = vpop.permute.xlu0 %839 }
 0xded   :  { %v842_v26 = vmul.f32 %v2044_v23, %v840_v24 }
 0xdef   :  { %844 = vrot.lane.b32.xlu0 %v842_v26, %s2134_s17 }
 0xe5d   :  { %v913_v28 = vpop.permute.xlu1 %912 }
 0xe5e   :  { %v2440_v29 = vadd.f32 %v913_v28, %v905_v27 }
 0xe60   :  { %2045 = vtanh.f32 %v2440_v29 }
 0xe61   :  { %v845_v58 = vpop.permute.xlu0 %844 }
 0xe62   :  { %v2444_v31 = vadd.f32 %v845_v58, %v837_v30 }
 0xe64   :  { %2047 = vtanh.f32 %v2444_v31 }
 0xe6d   :  { %v2046_v33 = vpop.eup %2045 }
 0xe6e   :  { %918 = vrot.lane.b32.xlu1 %v2046_v33, %s2133_s0 }
 0xe71   :  { %v2048_v34 = vpop.eup %2047 }
 0xe72   :  { %850 = vrot.lane.b32.xlu0 %v2048_v34, %s2133_s0 }
 0xee0   :  { %v919_v36 = vpop.permute.xlu1 %918 }
 0xee1   :  { %v921_v32 = vmul.f32 %v2042_v20, %v919_v36 }
 0xee3   :  { %v922_v37 = vpack.c.bf16 %v921_v32, %v921_v32 }
 0xee4   :  { %v851_v38 = vpop.permute.xlu0 %850 }
 0xee5   :  { %924 = vrot.lane.b32.xlu0 %v922_v37, %s2134_s17  ;;  %v853_v39 = vmul.f32 %v2044_v23, %v851_v38 }
 0xee7   :  { %v1437_v40 = vrot.slane %v853_v39, 5  ;;  %v1468_v35 = vrot.slane %v853_v39, 6  ;;  %v854_v41 = vpack.c.bf16 %v853_v39, %v853_v39 }
 0xee9   :  { %v2452_v42 = vsel %vm86_vm0, %v2409_v50, %v1437_v40  ;;  %v2456_v43 = vsel %vm86_vm0, %v2411_v51, %v1468_v35  ;;  %927 = vrot.lane.b32.xlu1 %v854_v41, %s2133_s0 }
 0xf57   :  { %v925_v44 = vpop.permute.xlu0 %924 }
 0xf58   :  { %1886 = vmatmul.mubr.msk.bf16.vlgmr.msra.gmra.mxu0 %vm252_vm7, %v925_v44 }
 0xf59   :  { %1890 = vmatpush3.bf16.msra.mxu0 %v2257_v14  ;;  %1897 = vmatprep.mubr.msk.bf16.mxu0 %vm2131_vm1, %v2130_v1 }
 0xf5a   :  { %1891 = vmatprep.subr.bf16.mxu0 %v2130_v1 }
 0xf5b   :  { %v928_v45 = vpop.permute.xlu1 %927 }
 0xf5c   :  { %v931_v46 = vsel %vm252_vm7, %v925_v44, %v928_v45 }
 0xf5d   :  { %1892 = vmatpush3.bf16.msra.mxu0 %v2263_v16  ;;  %1878 = vmatmul.mubr.msk.bf16.vlgmr.msra.gmra.mxu1 %vm355_vm8, %v931_v46 }
 0xf5e   :  { %1893 = vmatprep.subr.bf16.mxu0 %v2130_v1  ;;  %1902 = vmatpush3.bf16.msra.mxu1 %v2198_v13 }
 0xf5f   :  { %1905 = vmatprep.mubr.msk.bf16.mxu1 %vm2131_vm1, %v2130_v1  ;;  %1903 = vmatprep.subr.bf16.mxu1 %v2130_v1 }
 0xf61   :  { %1894 = vmatpush3.bf16.msra.mxu0 %v2270_v17 }
 0xf62   :  { %1895 = vmatprep.subr.bf16.mxu0 %v2130_v1  ;;  %1904 = vmatpush3.bf16.msra.mxu1 %v2208_v15 }
 0xf63   :  { %1909 = vmatprep.subr.bf16.mxu1 %v2130_v1 }
 0xf65   :  { %1896 = vmatpush3.bf16.msra.mxu0 %v2278_v19 }
 0xf66   :  { %1921 = vmatprep.subr.bf16.mxu0 %v2130_v1 }
0x1018   :  { %v1035_v47 = vpop.f32.mrf.mxu0 }
0x1019   :  { %v1041_v48 = vadd.f32 %v1035_v47, %v2241_v63 }
0x101a   :  { %v1887_v49 = vpop.f32.mrf.mxu0 }
0x101b   :  { %2049 = vtanh.f32 %v1041_v48  ;;  %v1676_v60 = vmul.f32 -1.442695, %v1041_v48 }
0x101c   :  { %v1038_v50 = vpop.f32.mrf.mxu0 }
0x101d   :  { %v968_v51 = vpop.f32.mrf.mxu1 }
0x101e   :  { %v1888_v53 = vpop.f32.mrf.mxu0  ;;  %v969_v4 = vadd.f32 %v2303_v25, %v968_v51 }
0x101f   :  { %v1879_v54 = vpop.f32.mrf.mxu1 }
0x1020   :  { %2051 = vtanh.f32 %v969_v4  ;;  %v1674_v63 = vmul.f32 -1.442695, %v969_v4 }
0x1021   :  { %v971_v52 = vpop.f32.mrf.mxu1  ;;  %2053 = vpow2.f32 %v1676_v60 }
0x1022   :  { %2055 = vpow2.f32 %v1674_v63 }
0x1023   :  { %v1880_v55 = vpop.f32.mrf.mxu1 }
0x1028   :  { %v2050_v56 = vpop.eup %2049 }
0x1029   :  { %1051 = vrot.lane.b32.xlu1 %v2050_v56, %s2133_s0 }
0x102d   :  { %v2052_v57 = vpop.eup %2051 }
0x102e   :  { %983 = vrot.lane.b32.xlu0 %v2052_v57, %s2133_s0  ;;  %v2054_v61 = vpop.eup %2053 }
0x102f   :  { %v1045_v3 = vadd.f32 1.0, %v2054_v61  ;;  %v2056_v5 = vpop.eup %2055 }
0x1030   :  { %v977_v6 = vadd.f32 1.0, %v2056_v5 }
0x1031   :  { %2057 = vrcp.f32 %v1045_v3 }
0x1032   :  { %2059 = vrcp.f32 %v977_v6 }
0x103e   :  { %v2058_v7 = vpop.eup %2057 }
0x103f   :  { %v2060_v10 = vpop.eup %2059  ;;  %v1049_v12 = vmul.f32 %v2058_v7, %v2440_v29 }
0x1040   :  { %v981_v20 = vmul.f32 %v2060_v10, %v2444_v31 }
0x109b   :  { %v1052_v8 = vpop.permute.xlu1 %1051 }
0x109c   :  { %v1054_v9 = vmul.f32 %v2058_v7, %v1052_v8 }
0x109e   :  { %1056 = vrot.lane.b32.xlu1 %v1054_v9, %s2134_s17 }
0x10a0   :  { %v984_v62 = vpop.permute.xlu0 %983 }
0x10a1   :  { %v986_v11 = vmul.f32 %v2060_v10, %v984_v62 }
0x10a3   :  { %988 = vrot.lane.b32.xlu0 %v986_v11, %s2134_s17 }
0x1110   :  { %v1057_v18 = vpop.permute.xlu1 %1056 }
0x1111   :  { %v2485_v59 = vadd.f32 %v1057_v18, %v1049_v12 }
0x1113   :  { %2061 = vtanh.f32 %v2485_v59 }
0x1115   :  { %v989_v21 = vpop.permute.xlu0 %988 }
0x1116   :  { %v2489_v22 = vadd.f32 %v989_v21, %v981_v20 }
0x1118   :  { %2063 = vtanh.f32 %v2489_v22 }
0x1120   :  { %v2062_v23 = vpop.eup %2061 }
0x1121   :  { %1062 = vrot.lane.b32.xlu1 %v2062_v23, %s2133_s0 }
0x1125   :  { %v2064_v24 = vpop.eup %2063 }
0x1126   :  { %994 = vrot.lane.b32.xlu0 %v2064_v24, %s2133_s0 }
0x1193   :  { %v1063_v26 = vpop.permute.xlu1 %1062 }
0x1194   :  { %v1065_v27 = vmul.f32 %v2058_v7, %v1063_v26 }
0x1196   :  { %v1066_v28 = vpack.c.bf16 %v1065_v27, %v1065_v27 }
0x1198   :  { %1068 = vrot.lane.b32.xlu0 %v1066_v28, %s2134_s17  ;;  %v995_v29 = vpop.permute.xlu0 %994 }
0x1199   :  { %v997_v30 = vmul.f32 %v2060_v10, %v995_v29 }
0x119b   :  { %v1440_v58 = vrot.slane %v997_v30, 4  ;;  %v1470_v31 = vrot.slane %v997_v30, 5  ;;  %v998_v33 = vpack.c.bf16 %v997_v30, %v997_v30 }
0x119d   :  { %v2496_v34 = vsel %vm1455_vm10, %v2452_v42, %v1440_v58  ;;  %v2499_v36 = vsel %vm1455_vm10, %v2456_v43, %v1470_v31  ;;  %1071 = vrot.lane.b32.xlu1 %v998_v33, %s2133_s0 }
0x120a   :  { %v1069_v32 = vpop.permute.xlu0 %1068 }
0x120b   :  { %1906 = vmatmul.mubr.msk.bf16.vlgmr.msra.gmra.mxu1 %vm252_vm7, %v1069_v32 }
0x120c   :  { %1910 = vmatpush3.bf16.msra.mxu1 %v2257_v14  ;;  %1917 = vmatprep.mubr.msk.bf16.mxu1 %vm2131_vm1, %v2130_v1 }
0x120d   :  { %1911 = vmatprep.subr.bf16.mxu1 %v2130_v1 }
0x120f   :  { %v1072_v37 = vpop.permute.xlu1 %1071 }
0x1210   :  { %1912 = vmatpush3.bf16.msra.mxu1 %v2263_v16  ;;  %v1075_v38 = vsel %vm252_vm7, %v1069_v32, %v1072_v37 }
0x1211   :  { %1913 = vmatprep.subr.bf16.mxu1 %v2130_v1  ;;  %1898 = vmatmul.mubr.msk.bf16.vlgmr.msra.gmra.mxu0 %vm355_vm8, %v1075_v38 }
0x1212   :  { %1922 = vmatpush3.bf16.msra.mxu0 %v2198_v13  ;;  %1925 = vmatprep.mubr.msk.bf16.mxu0 %vm2131_vm1, %v2130_v1 }
0x1213   :  { %1923 = vmatprep.subr.bf16.mxu0 %v2130_v1 }
0x1214   :  { %1914 = vmatpush3.bf16.msra.mxu1 %v2270_v17 }
0x1215   :  { %1915 = vmatprep.subr.bf16.mxu1 %v2130_v1 }
0x1216   :  { %1924 = vmatpush3.bf16.msra.mxu0 %v2208_v15 }
0x1217   :  { %1929 = vmatprep.subr.bf16.mxu0 %v2130_v1 }
0x1218   :  { %1916 = vmatpush3.bf16.msra.mxu1 %v2278_v19 }
0x1219   :  { %1941 = vmatprep.subr.bf16.mxu1 %v2130_v1 }
0x12cb   :  { %v1179_v39 = vpop.f32.mrf.mxu1 }
0x12cc   :  { %v1185_v13 = vadd.f32 %v1179_v39, %v2244_v0 }
0x12cd   :  { %v1907_v40 = vpop.f32.mrf.mxu1 }
0x12ce   :  { %2065 = vtanh.f32 %v1185_v13  ;;  %v1680_v48 = vmul.f32 -1.442695, %v1185_v13 }
0x12cf   :  { %v1182_v35 = vpop.f32.mrf.mxu1 }
0x12d1   :  { %v1908_v41 = vpop.f32.mrf.mxu1  ;;  %v1112_v42 = vpop.f32.mrf.mxu0 }
0x12d2   :  { %v1113_v43 = vadd.f32 %v2303_v25, %v1112_v42 }
0x12d3   :  { %v1899_v44 = vpop.f32.mrf.mxu0 }
0x12d4   :  { %2067 = vtanh.f32 %v1113_v43  ;;  %v1678_v0 = vmul.f32 -1.442695, %v1113_v43 }
0x12d5   :  { %v1115_v45 = vpop.f32.mrf.mxu0  ;;  %2069 = vpow2.f32 %v1680_v48 }
0x12d6   :  { %2071 = vpow2.f32 %v1678_v0 }
0x12d7   :  { %v1900_v15 = vpop.f32.mrf.mxu0 }
0x12db   :  { %v2066_v46 = vpop.eup %2065 }
0x12dc   :  { %1195 = vrot.lane.b32.xlu1 %v2066_v46, %s2133_s0 }
0x12e1   :  { %v2068_v47 = vpop.eup %2067 }
0x12e2   :  { %1127 = vrot.lane.b32.xlu0 %v2068_v47, %s2133_s0  ;;  %v2070_v49 = vpop.eup %2069 }
0x12e3   :  { %v1189_v50 = vadd.f32 1.0, %v2070_v49  ;;  %v2072_v51 = vpop.eup %2071 }
0x12e4   :  { %v1121_v53 = vadd.f32 1.0, %v2072_v51 }
0x12e5   :  { %2073 = vrcp.f32 %v1189_v50 }
0x12e6   :  { %2075 = vrcp.f32 %v1121_v53 }
0x12f2   :  { %v2074_v4 = vpop.eup %2073 }
0x12f3   :  { %v2076_v55 = vpop.eup %2075  ;;  %v1193_v60 = vmul.f32 %v2074_v4, %v2485_v59 }
0x12f4   :  { %v1125_v3 = vmul.f32 %v2076_v55, %v2489_v22 }
0x134e   :  { %v1196_v54 = vpop.permute.xlu1 %1195 }
0x134f   :  { %v1198_v52 = vmul.f32 %v2074_v4, %v1196_v54 }
0x1351   :  { %1200 = vrot.lane.b32.xlu1 %v1198_v52, %s2134_s17 }
0x1354   :  { %v1128_v56 = vpop.permute.xlu0 %1127 }
0x1355   :  { %v1130_v57 = vmul.f32 %v2076_v55, %v1128_v56 }
0x1357   :  { %1132 = vrot.lane.b32.xlu0 %v1130_v57, %s2134_s17 }
0x13c3   :  { %v1201_v63 = vpop.permute.xlu1 %1200 }
0x13c4   :  { %v2528_v61 = vadd.f32 %v1201_v63, %v1193_v60 }
0x13c6   :  { %2077 = vtanh.f32 %v2528_v61 }
0x13c9   :  { %v1133_v5 = vpop.permute.xlu0 %1132 }
0x13ca   :  { %v2532_v6 = vadd.f32 %v1133_v5, %v1125_v3  ;;  %v2105_v5 = vld [vmem:[#allocation2 + $0x2] ss:$0 sm:$0xff] }
0x13cc   :  { %2079 = vtanh.f32 %v2532_v6 }
0x13d3   :  { %v2078_v7 = vpop.eup %2077 }
0x13d4   :  { %1206 = vrot.lane.b32.xlu1 %v2078_v7, %s2133_s0 }
0x13d9   :  { %v2080_v8 = vpop.eup %2079 }
0x13da   :  { %1138 = vrot.lane.b32.xlu0 %v2080_v8, %s2133_s0 }
0x1446   :  { %v1207_v9 = vpop.permute.xlu1 %1206 }
0x1447   :  { %v1209_v10 = vmul.f32 %v2074_v4, %v1207_v9 }
0x1449   :  { %v1210_v62 = vpack.c.bf16 %v1209_v10, %v1209_v10 }
0x144b   :  { %1212 = vrot.lane.b32.xlu0 %v1210_v62, %s2134_s17 }
0x144c   :  { %v1139_v11 = vpop.permute.xlu0 %1138 }
0x144d   :  { %v1141_v12 = vmul.f32 %v2076_v55, %v1139_v11 }
0x144f   :  { %v1443_v18 = vrot.slane %v1141_v12, 3  ;;  %v1472_v59 = vrot.slane %v1141_v12, 4  ;;  %v1142_v20 = vpack.c.bf16 %v1141_v12, %v1141_v12 }
0x1451   :  { %v2539_v21 = vsel %vm1457_vm11, %v2496_v34, %v1443_v18  ;;  %v2542_v22 = vsel %vm1457_vm11, %v2499_v36, %v1472_v59  ;;  %1215 = vrot.lane.b32.xlu1 %v1142_v20, %s2133_s0 }
0x14bd   :  { %v1213_v23 = vpop.permute.xlu0 %1212 }
0x14be   :  { %1926 = vmatmul.mubr.msk.bf16.vlgmr.msra.gmra.mxu0 %vm252_vm7, %v1213_v23 }
0x14bf   :  { %1930 = vmatpush3.bf16.msra.mxu0 %v2257_v14  ;;  %1937 = vmatprep.mubr.msk.bf16.mxu0 %vm2131_vm1, %v2130_v1 }
0x14c0   :  { %1931 = vmatprep.subr.bf16.mxu0 %v2130_v1 }
0x14c3   :  { %1932 = vmatpush3.bf16.msra.mxu0 %v2263_v16  ;;  %v1216_v24 = vpop.permute.xlu1 %1215 }
0x14c4   :  { %1933 = vmatprep.subr.bf16.mxu0 %v2130_v1  ;;  %v1219_v26 = vsel %vm252_vm7, %v1213_v23, %v1216_v24  ;;  %v1973_v24 = vld [vmem:[%s2613_s3 + $0x10] sm:$0xff]  }
0x14c5   :  { %1918 = vmatmul.mubr.msk.bf16.vlgmr.msra.gmra.mxu1 %vm355_vm8, %v1219_v26 }
0x14c6   :  { %1945 = vmatprep.mubr.msk.bf16.mxu1 %vm2131_vm1, %v2130_v1  ;;  %1942 = vmatpush3.bf16.msra.mxu1 %v1973_v24 }
0x14c7   :  { %1934 = vmatpush3.bf16.msra.mxu0 %v2270_v17  ;;  %1943 = vmatprep.subr.bf16.mxu1 %v2130_v1 }
0x14c8   :  { %1935 = vmatprep.subr.bf16.mxu0 %v2130_v1 }
0x14cb   :  { %1936 = vmatpush3.bf16.msra.mxu0 %v2278_v19 }
0x157e   :  { %v1323_v14 = vpop.f32.mrf.mxu0 }
0x157f   :  { %v1329_v27 = vadd.f32 %v1323_v14, %v2247_v2  ;;  %v1974_v14 = vld [vmem:[%s2613_s3 + $0x8] sm:$0xff]  }
0x1580   :  { %v1927_v16 = vpop.f32.mrf.mxu0  ;;  %1944 = vmatpush3.bf16.msra.mxu1 %v1974_v14 }
0x1581   :  { %2081 = vtanh.f32 %v1329_v27  ;;  %v1684_v19 = vmul.f32 -1.442695, %v1329_v27  ;;  %1949 = vmatprep.subr.bf16.mxu1 %v2130_v1 }
0x1582   :  { %v1326_v28 = vpop.f32.mrf.mxu0 }
0x1584   :  { %v1928_v29 = vpop.f32.mrf.mxu0 }
0x1585   :  { %v1256_v30 = vpop.f32.mrf.mxu1 }
0x1586   :  { %v1257_v58 = vadd.f32 %v2303_v25, %v1256_v30 }
0x1587   :  { %v1919_v31 = vpop.f32.mrf.mxu1 }
0x1588   :  { %2083 = vtanh.f32 %v1257_v58  ;;  %v1682_v2 = vmul.f32 -1.442695, %v1257_v58 }
0x1589   :  { %v1259_v17 = vpop.f32.mrf.mxu1  ;;  %2085 = vpow2.f32 %v1684_v19 }
0x158a   :  { %2087 = vpow2.f32 %v1682_v2  ;;  %v1975_v2 = vld [vmem:[%s2613_s3 + $0x20] sm:$0xff]  }
0x158b   :  { %v1920_v33 = vpop.f32.mrf.mxu1 }
0x158e   :  { %v2082_v34 = vpop.eup %2081 }
0x158f   :  { %1339 = vrot.lane.b32.xlu1 %v2082_v34, %s2133_s0 }
0x1595   :  { %v2084_v36 = vpop.eup %2083 }
0x1596   :  { %1271 = vrot.lane.b32.xlu0 %v2084_v36, %s2133_s0  ;;  %v2086_v32 = vpop.eup %2085 }
0x1597   :  { %v1333_v37 = vadd.f32 1.0, %v2086_v32  ;;  %v2088_v38 = vpop.eup %2087  ;;  %v1976_v32 = vld [vmem:[%s2613_s3 + $0x18] sm:$0xff]  }
0x1598   :  { %v1265_v39 = vadd.f32 1.0, %v2088_v38 }
0x1599   :  { %2089 = vrcp.f32 %v1333_v37  ;;  %v1687_v37 = vld [vmem:[#allocation2 + $0x3] ss:$0 sm:$0xff] }
0x159a   :  { %2091 = vrcp.f32 %v1265_v39 }
0x15a6   :  { %v2090_v25 = vpop.eup %2089 }
0x15a7   :  { %v2092_v35 = vpop.eup %2091  ;;  %v1337_v43 = vmul.f32 %v2090_v25, %v2528_v61 }
0x15a8   :  { %v1269_v15 = vmul.f32 %v2092_v35, %v2532_v6 }
0x1601   :  { %v1340_v13 = vpop.permute.xlu1 %1339 }
0x1602   :  { %v1342_v40 = vmul.f32 %v2090_v25, %v1340_v13 }
0x1604   :  { %1344 = vrot.lane.b32.xlu1 %v1342_v40, %s2134_s17 }
0x1608   :  { %v1272_v41 = vpop.permute.xlu0 %1271 }
0x1609   :  { %v1274_v42 = vmul.f32 %v2092_v35, %v1272_v41 }
0x160b   :  { %1276 = vrot.lane.b32.xlu0 %v1274_v42, %s2134_s17 }
0x1676   :  { %v1345_v44 = vpop.permute.xlu1 %1344 }
0x1677   :  { %v1347_v45 = vadd.f32 %v1345_v44, %v1337_v43 }
0x1679   :  { %2093 = vtanh.f32 %v1347_v45 }
0x167d   :  { %v1277_v46 = vpop.permute.xlu0 %1276 }
0x167e   :  { %v1279_v47 = vadd.f32 %v1277_v46, %v1269_v15 }
0x1680   :  { %2095 = vtanh.f32 %v1279_v47 }
0x1686   :  { %v2094_v48 = vpop.eup %2093 }
0x1687   :  { %1350 = vrot.lane.b32.xlu1 %v2094_v48, %s2133_s0 }
0x168d   :  { %v2096_v0 = vpop.eup %2095 }
0x168e   :  { %1282 = vrot.lane.b32.xlu0 %v2096_v0, %s2133_s0 }
0x16f9   :  { %v1351_v49 = vpop.permute.xlu1 %1350 }
0x16fa   :  { %v1353_v50 = vmul.f32 %v2090_v25, %v1351_v49 }
0x16fc   :  { %v1354_v51 = vpack.c.bf16 %v1353_v50, %v1353_v50 }
0x16fe   :  { %1356 = vrot.lane.b32.xlu0 %v1354_v51, %s2134_s17 }
0x1700   :  { %v1283_v53 = vpop.permute.xlu0 %1282 }
0x1701   :  { %v1285_v4 = vmul.f32 %v2092_v35, %v1283_v53 }
0x1703   :  { %v1446_v54 = vrot.slane %v1285_v4, 2  ;;  %v1474_v52 = vrot.slane %v1285_v4, 3  ;;  %v1286_v55 = vpack.c.bf16 %v1285_v4, %v1285_v4 }
0x1705   :  { %1359 = vrot.lane.b32.xlu1 %v1286_v55, %s2133_s0  ;;  %v1460_v56 = vsel %vm1459_vm12, %v2539_v21, %v1446_v54  ;;  %v1483_v57 = vsel %vm1459_vm12, %v2542_v22, %v1474_v52 }
0x1770   :  { %v1357_v60 = vpop.permute.xlu0 %1356 }
0x1777   :  { %v1360_v63 = vpop.permute.xlu1 %1359 }
0x1778   :  { %v1363_v61 = vsel %vm252_vm7, %v1357_v60, %v1360_v63 }
0x1779   :  { %1938 = vmatmul.mubr.msk.bf16.vlgmr.msra.gmra.mxu0 %vm355_vm8, %v1363_v61 }
0x1839   :  { %v1400_v3 = vpop.f32.mrf.mxu0 }
0x183a   :  { %v1401_v6 = vadd.f32 %v2105_v5, %v1400_v3 }
0x183b   :  { %v1939_v7 = vpop.f32.mrf.mxu0 }
0x183c   :  { %2097 = vtanh.f32 %v1401_v6  ;;  %v1686_v62 = vmul.f32 -1.442695, %v1401_v6 }
0x183d   :  { %v1403_v8 = vpop.f32.mrf.mxu0 }
0x183e   :  { %2099 = vpow2.f32 %v1686_v62 }
0x183f   :  { %v1940_v9 = vpop.f32.mrf.mxu0 }
0x1849   :  { %v2098_v10 = vpop.eup %2097 }
0x184a   :  { %1415 = vrot.lane.b32.xlu0 %v2098_v10, %s2133_s0 }
0x184b   :  { %v2100_v11 = vpop.eup %2099 }
0x184c   :  { %v1409_v12 = vadd.f32 1.0, %v2100_v11 }
0x184e   :  { %2101 = vrcp.f32 %v1409_v12 }
0x185b   :  { %v2102_v18 = vpop.eup %2101 }
0x185c   :  { %v1413_v21 = vmul.f32 %v2102_v18, %v1279_v47 }
0x18bc   :  { %v1416_v59 = vpop.permute.xlu0 %1415 }
0x18bd   :  { %v1418_v20 = vmul.f32 %v2102_v18, %v1416_v59 }
0x18bf   :  { %1420 = vrot.lane.b32.xlu1 %v1418_v20, %s2134_s17 }
0x1931   :  { %v1421_v22 = vpop.permute.xlu1 %1420 }
0x1932   :  { %v1423_v23 = vadd.f32 %v1421_v22, %v1413_v21 }
0x1934   :  { %2103 = vtanh.f32 %v1423_v23 }
0x1941   :  { %v2104_v26 = vpop.eup %2103 }
0x1942   :  { %1426 = vrot.lane.b32.xlu0 %v2104_v26, %s2133_s0 }
0x19b4   :  { %v1427_v27 = vpop.permute.xlu0 %1426 }
0x19b5   :  { %v1429_v16 = vmul.f32 %v2102_v18, %v1427_v27 }
0x19b7   :  { %v1449_v28 = vrot.slane %v1429_v16, 1  ;;  %v1476_v29 = vrot.slane %v1429_v16, 2 }
0x19b9   :  { %v1462_v30 = vsel %vm1461_vm13, %v1460_v56, %v1449_v28  ;;  %v1484_v58 = vsel %vm1461_vm13, %v1483_v57, %v1476_v29 }
0x19ba   :  { %v1487_v31 = vmul.f32 0.02, %v1462_v30  ;;  %v1488_v17 = vmul.f32 0.02, %v1484_v58  ;;  %vm1485_vm14 = vcmp.gt.f32.partialorder %v1462_v30, 0.0  ;;  %vm1486_vm15 = vcmp.gt.f32.partialorder %v1484_v58, 0.0 }
0x19bc   :  { %v1489_v33 = vsel %vm1485_vm14, %v1462_v30, %v1487_v31  ;;  %v1490_v34 = vsel %vm1486_vm15, %v1484_v58, %v1488_v17 }
0x19bd   :  { %v1491_v36 = vpack.c.bf16 %v1490_v34, %v1489_v33 }
0x19bf   :  { %1497 = vrot.lane.b32.xlu1 %v1491_v36, %s2134_s17 }
0x1a31   :  { %v1498_v19 = vpop.permute.xlu1 %1497 }
0x1a32   :  { %1946 = vmatmul.mubr.msk.bf16.vlgmr.msra.gmra.mxu1 %vm252_vm7, %v1498_v19 }
0x1a33   :  { %1953 = vmatprep.mubr.msk.bf16.mxu1 %vm2131_vm1, %v2130_v1  ;;  %1950 = vmatpush3.bf16.msra.mxu1 %v1975_v2 }
0x1a34   :  { %1951 = vmatprep.subr.bf16.mxu1 %v2130_v1  ;;  %v1691_v1 = vld [vmem:[#allocation2 + $0x4] ss:$0 sm:$0xff] }
0x1a37   :  { %1952 = vmatpush3.bf16.msra.mxu1 %v1976_v32 }
0x1af2   :  { %v1548_v38 = vpop.f32.mrf.mxu1 }
0x1af3   :  { %v1549_v39 = vadd.f32 %v1687_v37, %v1548_v38 }
0x1af4   :  { %v1947_v25 = vpop.f32.mrf.mxu1 }
0x1af5   :  { %v1557_v40 = vmul.f32 0.02, %v1549_v39  ;;  %vm1555_vm0 = vcmp.gt.f32.partialorder %v1549_v39, 0.0 }
0x1af6   :  { %v1551_v13 = vpop.f32.mrf.mxu1 }
0x1af7   :  { %v1552_v35 = vadd.f32 %v1687_v37, %v1551_v13  ;;  %v1559_v43 = vsel %vm1555_vm0, %v1549_v39, %v1557_v40 }
0x1af8   :  { %v1948_v41 = vpop.f32.mrf.mxu1 }
0x1af9   :  { %vm1556_vm1 = vcmp.gt.f32.partialorder %v1552_v35, 0.0  ;;  %v1558_v42 = vmul.f32 0.02, %v1552_v35 }
0x1afb   :  { %v1560_v44 = vsel %vm1556_vm1, %v1552_v35, %v1558_v42 }
0x1afc   :  { %v1561_v45 = vpack.c.bf16 %v1560_v44, %v1559_v43 }
0x1afe   :  { %1954 = vmatmul.mubr.msk.bf16.vlgmr.msra.gmra.mxu1 %vm252_vm7, %v1561_v45 }
0x1bbe   :  { %v1615_v15 = vpop.f32.mrf.mxu1 }
0x1bbf   :  { %v1616_v46 = vadd.f32 %v1691_v1, %v1615_v15 }
0x1bc0   :  { %v1955_v47 = vpop.f32.mrf.mxu1 }
0x1bc1   :  { %1623 = vst.msk [vmem:[%s2615_s5] sm:$0xff] %vm1622_vm2, %v1616_v46  ;;  %1627 = vrot.lane.b32.xlu0 %v1616_v46, %s2135_s8 }
0x1bc2   :  { %v1618_v48 = vpop.f32.mrf.mxu1 }
0x1bc3   :  { %v1619_v0 = vadd.f32 %v1691_v1, %v1618_v48 }
0x1bc4   :  { %v1956_v49 = vpop.f32.mrf.mxu1 }
0x1bc5   :  { %1624 = vst.msk [vmem:[%s2615_s5 + $0x8] sm:$0xff] %vm1622_vm2, %v1619_v0  ;;  %1629 = vrot.lane.b32.xlu1 %v1619_v0, %s2135_s8 }
0x1c33   :  { %v1628_v50 = vpop.permute.xlu0 %1627 }
0x1c34   :  { %1633 = vst.msk [vmem:[%s2616_s6] sm:$0xff] %vm1622_vm2, %v1628_v50 }
0x1c37   :  { %v1630_v51 = vpop.permute.xlu1 %1629 }
0x1c38   :  { %1634 = vst.msk [vmem:[%s2616_s6 + $0x8] sm:$0xff] %vm1622_vm2, %v1630_v51 }
0x1c39   :  { %1643 = vsyncpa [#allocation3], 1 }

</bundles_post_ra>
